<compile_context>
chip_gen: v7x
topology: tpu7x:2x2x1
jax: 0.10.0
libtpu: 0.0.40
codegen_flags: <defaults>
</compile_context>

<pallas_src>
import functools
import math

import jax
import jax.numpy as jnp
from jax.experimental import pallas as pl
from jax.experimental.pallas import tpu as pltpu


def _round_up(x, m):
    return ((x + m - 1) // m) * m


def graph_encoder_kernel(adj_ref, x_ref, wt_ref, bt_ref, wh_ref, bh_ref,
                         out_ref, acc_ref, *, z_dim):
    k = pl.program_id(1)

    @pl.when(k == 0)
    def _():
        acc_ref[...] = jnp.zeros_like(acc_ref)

    # support tile accumulation over the graph (contraction) axis:
    # bf16 adj/x on the MXU, f32 accumulation in VMEM scratch.
    acc_ref[...] += jnp.dot(adj_ref[...], x_ref[...],
                            preferred_element_type=jnp.float32)

    # Epilogue only on the last contraction step for this row tile.
    @pl.when(k == pl.num_programs(1) - 1)
    def _():
        support = acc_ref[...]                                            # [tm, in_dim] f32
        pre = jnp.dot(support, wt_ref[...],
                      preferred_element_type=jnp.float32) + bt_ref[...]
        h = jax.nn.softplus(pre)                                          # [tm, hidden]

        # Fused heads: one lane-dense [tm, HPAD] matmul.
        # Columns [0, z_dim)       -> z_loc
        # Columns [z_dim, 2*z_dim) -> pre-activation of z_scale (exp(clip(.,-5,5)))
        # Columns >= 2*z_dim       -> zero padding (sliced off in the wrapper)
        z = jnp.dot(h, wh_ref[...],
                    preferred_element_type=jnp.float32) + bh_ref[...]
        col = jax.lax.broadcasted_iota(jnp.int32, z.shape, dimension=1)
        is_scale = (col >= z_dim) & (col < 2 * z_dim)
        out = jnp.where(is_scale, jnp.exp(jnp.clip(z, -5.0, 5.0)), z)
        out_ref[...] = out.astype(out_ref.dtype)


def graph_encoder_forward(x, adj, start, end, params, *, tm=512, tk=1024):
    """Pallas-backed forward.

    x:   [N, in_dim] float32
    adj: [N, N]      float32 (dense; torch.spmm semantics == dense matmul)
    start, end: python ints, row slice of the support matrix.
    params: w_test/b_test, w21/b21, w22/b22, all weights stored [in, out].
    Returns (z_loc, z_scale), each [end - start, z_dim] float32.
    """
    M = end - start
    N, in_dim = x.shape
    hidden_dim = params["w_test"].shape[1]
    z_dim = params["w21"].shape[1]

    # ---- fuse + lane-pad the two heads: [hidden, 2*z_dim] -> [hidden, HPAD] ----
    hpad = _round_up(max(2 * z_dim, 128), 128)
    w_heads = jnp.concatenate([params["w21"], params["w22"]], axis=1)
    b_heads = jnp.concatenate([params["b21"], params["b22"]], axis=1)
    w_heads = jnp.pad(w_heads, ((0, 0), (0, hpad - 2 * z_dim)))
    b_heads = jnp.pad(b_heads, ((0, 0), (0, hpad - 2 * z_dim)))

    # ---- tiling: rows of the output slice x graph (contraction) axis ----
    tm = min(tm, _round_up(M, 8))
    tk = min(tk, _round_up(N, 128))
    Mp = _round_up(M, tm)
    Np = _round_up(N, tk)

    # Row slice + bf16 cast fused into one cheap XLA op; only the needed rows of adj
    # are read from HBM, and the kernel streams bf16 (half the bytes of f32).
    # TODO(synk): when `start` is tile-aligned the slice could be folded into the adj
    # index_map (block offset start // tm) to avoid materializing the bf16 copy at all.
    adj_s = adj[start:end, :].astype(jnp.bfloat16)
    adj_s = jnp.pad(adj_s, ((0, Mp - M), (0, Np - N)))
    x_p = jnp.pad(x.astype(jnp.bfloat16), ((0, Np - N), (0, 0)))

    grid = (Mp // tm, Np // tk)

    flops = (2 * Mp * Np * in_dim
             + 2 * Mp * in_dim * hidden_dim
             + 2 * Mp * hidden_dim * hpad)
    bytes_accessed = (Mp * Np * 2 + Np * in_dim * 2
                      + in_dim * hidden_dim * 4 + hidden_dim * hpad * 4
                      + Mp * hpad * 4)

    out = pl.pallas_call(
        functools.partial(graph_encoder_kernel, z_dim=z_dim),
        out_shape=jax.ShapeDtypeStruct((Mp, hpad), jnp.float32),
        grid_spec=pltpu.PrefetchScalarGridSpec(
            num_scalar_prefetch=0,
            grid=grid,
            in_specs=[
                pl.BlockSpec((tm, tk), lambda i, k: (i, k)),              # adj tile (bf16)
                pl.BlockSpec((tk, in_dim), lambda i, k: (k, 0)),          # x tile   (bf16)
                pl.BlockSpec((in_dim, hidden_dim), lambda i, k: (0, 0)),  # W_test (resident)
                pl.BlockSpec((1, hidden_dim), lambda i, k: (0, 0)),       # b_test
                pl.BlockSpec((hidden_dim, hpad), lambda i, k: (0, 0)),    # packed heads W
                pl.BlockSpec((1, hpad), lambda i, k: (0, 0)),             # packed heads b
            ],
            out_specs=pl.BlockSpec((tm, hpad), lambda i, k: (i, 0)),
            scratch_shapes=[pltpu.VMEM((tm, in_dim), jnp.float32)],       # support accumulator
        ),
        compiler_params=pltpu.CompilerParams(
            dimension_semantics=("parallel", "arbitrary"),
            vmem_limit_bytes=48 * 1024 * 1024,
        ),
        cost_estimate=pl.CostEstimate(
            flops=int(flops),
            transcendentals=int(3 * Mp * hidden_dim + Mp * hpad),
            bytes_accessed=int(bytes_accessed),
        ),
    )(adj_s, x_p, params["w_test"], params["b_test"], w_heads, b_heads)

    z_loc = out[:M, :z_dim]
    z_scale = out[:M, z_dim:2 * z_dim]
    return z_loc, z_scale


def init_params(key, in_dim, hidden_dim, z_dim):
    """Deterministic PyTorch-Linear-style init; weights stored as [in, out]."""
    ks = jax.random.split(key, 6)

    def linear(kw, kb, fan_in, fan_out):
        bound = 1.0 / math.sqrt(fan_in)
        w = jax.random.uniform(kw, (fan_in, fan_out), jnp.float32, -bound, bound)
        b = jax.random.uniform(kb, (1, fan_out), jnp.float32, -bound, bound)
        return w, b

    w_test, b_test = linear(ks[0], ks[1], in_dim, hidden_dim)
    w21, b21 = linear(ks[2], ks[3], hidden_dim, z_dim)
    w22, b22 = linear(ks[4], ks[5], hidden_dim, z_dim)
    return {"w_test": w_test, "b_test": b_test,
            "w21": w21, "b21": b21,
            "w22": w22, "b22": b22}


def reference_forward(x, adj, start, end, params, *, cast_bf16=False):
    """Pure-JAX reference mirroring the PyTorch module."""
    if cast_bf16:
        support = jnp.dot(adj.astype(jnp.bfloat16), x.astype(jnp.bfloat16),
                          preferred_element_type=jnp.float32)
    else:
        support = adj @ x
    hidden1 = support[start:end, :]
    h = jax.nn.softplus(hidden1 @ params["w_test"] + params["b_test"])
    z_loc = h @ params["w21"] + params["b21"]
    z_scale = jnp.exp(jnp.clip(h @ params["w22"] + params["b22"], -5.0, 5.0))
    return z_loc, z_scale


if __name__ == "__main__":
    key = jax.random.PRNGKey(0)
    k_x, k_adj, k_p = jax.random.split(key, 3)

    # Small but non-trivial shapes: enough nodes to exercise the contraction grid.
    N, in_dim, hidden_dim, z_dim = 256, 32, 32, 8
    start, end = 8, 200                       # M = 192 rows of the support matrix

    x = jax.random.normal(k_x, (N, in_dim), jnp.float32)
    adj = jax.random.uniform(k_adj, (N, N), jnp.float32)
    adj = adj / jnp.sum(adj, axis=1, keepdims=True)   # row-normalized GCN adjacency

    params = init_params(k_p, in_dim, hidden_dim, z_dim)

    # 1) default (large-tile) path
    z_loc, z_scale = graph_encoder_forward(x, adj, start, end, params)
    # 2) forced multi-tile path: grid = (3 row tiles, 2 contraction steps)
    z_loc2, z_scale2 = graph_encoder_forward(x, adj, start, end, params, tm=64, tk=128)
    jax.block_until_ready((z_loc, z_scale, z_loc2, z_scale2))

    M = end - start
    assert z_loc.shape == (M, z_dim) and z_scale.shape == (M, z_dim)

    # Tight check vs a reference that uses the same bf16 adj/x stream.
    zl_bf, zs_bf = reference_forward(x, adj, start, end, params, cast_bf16=True)
    assert jnp.allclose(z_loc, zl_bf, atol=5e-3, rtol=5e-3)
    assert jnp.allclose(z_scale, zs_bf, atol=5e-3, rtol=5e-3)
    assert jnp.allclose(z_loc2, zl_bf, atol=5e-3, rtol=5e-3)
    assert jnp.allclose(z_scale2, zs_bf, atol=5e-3, rtol=5e-3)

    # Looser sanity check vs the full-f32 PyTorch-equivalent reference
    # (bf16 adj/x stream changes results at the ~1e-3 level).
    zl_f32, zs_f32 = reference_forward(x, adj, start, end, params, cast_bf16=False)
    assert jnp.allclose(z_loc, zl_f32, atol=5e-2, rtol=5e-2)
    assert jnp.allclose(z_scale, zs_f32, atol=5e-2, rtol=5e-2)

    print("KERNEL_OK")
</pallas_src>

<mosaic_0001>
module attributes {stable_mosaic.version = 11 : i64} {
  func.func @graph_encoder_kernel(%arg0: i32, %arg1: i32, %arg2: memref<192x256xbf16, #tpu.memory_space<vmem>>, %arg3: memref<256x32xbf16, #tpu.memory_space<vmem>>, %arg4: memref<32x32xf32, #tpu.memory_space<vmem>>, %arg5: memref<1x32xf32, #tpu.memory_space<vmem>>, %arg6: memref<32x128xf32, #tpu.memory_space<vmem>>, %arg7: memref<1x128xf32, #tpu.memory_space<vmem>>, %arg8: memref<192x128xf32, #tpu.memory_space<vmem>>, %arg9: memref<192x32xf32, #tpu.memory_space<vmem>>) attributes {dimension_semantics = [#tpu.dimension_semantics<parallel>, #tpu.dimension_semantics<arbitrary>], iteration_bounds = array<i64: 1, 1>, scalar_prefetch = 0 : i64, scratch_operands = 1 : i64, tpu.core_type = #tpu.core_type<tc>, window_params = [{transform_indices = @transform_0, window_bounds = array<i64: 192, 256>}, {transform_indices = @transform_1, window_bounds = array<i64: 256, 32>}, {pipeline_mode = #tpu.pipeline_mode<synchronous>, transform_indices = @transform_2, window_bounds = array<i64: 32, 32>}, {pipeline_mode = #tpu.pipeline_mode<synchronous>, transform_indices = @transform_3, window_bounds = array<i64: 1, 32>}, {pipeline_mode = #tpu.pipeline_mode<synchronous>, transform_indices = @transform_4, window_bounds = array<i64: 32, 128>}, {pipeline_mode = #tpu.pipeline_mode<synchronous>, transform_indices = @transform_5, window_bounds = array<i64: 1, 128>}, {transform_indices = @transform_6, window_bounds = array<i64: 192, 128>}]} {
    %c0_i32 = arith.constant 0 : i32
    %0 = arith.cmpi eq, %arg1, %c0_i32 : i32
    %1 = arith.extui %0 : i1 to i32
    %c0_i32_0 = arith.constant 0 : i32
    %2 = arith.cmpi ne, %1, %c0_i32_0 : i32
    scf.if %2 {
      %cst_10 = arith.constant 0.000000e+00 : f32
      %12 = vector.broadcast %cst_10 : f32 to vector<192x32xf32>
      %c0_11 = arith.constant 0 : index
      %c0_12 = arith.constant 0 : index
      %13 = vector.load %arg9[%c0_11, %c0_12] : memref<192x32xf32, #tpu.memory_space<vmem>>, vector<192x32xf32>
      tpu.vector_store %arg9[%c0_11, %c0_12], %12 {strides = array<i32>} : memref<192x32xf32, #tpu.memory_space<vmem>>, vector<192x32xf32>,
    } else {
    }
    %c0 = arith.constant 0 : index
    %c0_1 = arith.constant 0 : index
    %3 = vector.load %arg9[%c0, %c0_1] : memref<192x32xf32, #tpu.memory_space<vmem>>, vector<192x32xf32>
    %c0_2 = arith.constant 0 : index
    %c0_3 = arith.constant 0 : index
    %4 = vector.load %arg2[%c0_2, %c0_3] : memref<192x256xbf16, #tpu.memory_space<vmem>>, vector<192x256xbf16>
    %c0_4 = arith.constant 0 : index
    %c0_5 = arith.constant 0 : index
    %5 = vector.load %arg3[%c0_4, %c0_5] : memref<256x32xbf16, #tpu.memory_space<vmem>>, vector<256x32xbf16>
    %cst = arith.constant dense<0.000000e+00> : vector<192x32xf32>
    %6 = tpu.matmul %4, %5, %cst {dimension_numbers = #tpu.dot_dimension_numbers<[1], [0], [0], [1], [0, 0, 1, 1], [], []>} : vector<192x256xbf16>, vector<256x32xbf16>, vector<192x32xf32> -> vector<192x32xf32>
    %7 = arith.addf %3, %6 : vector<192x32xf32>
    %c0_6 = arith.constant 0 : index
    %c0_7 = arith.constant 0 : index
    %8 = vector.load %arg9[%c0_6, %c0_7] : memref<192x32xf32, #tpu.memory_space<vmem>>, vector<192x32xf32>
    tpu.vector_store %arg9[%c0_6, %c0_7], %7 {strides = array<i32>} : memref<192x32xf32, #tpu.memory_space<vmem>>, vector<192x32xf32>,
    %c0_i32_8 = arith.constant 0 : i32
    %9 = arith.cmpi eq, %arg1, %c0_i32_8 : i32
    %10 = arith.extui %9 : i1 to i32
    %c0_i32_9 = arith.constant 0 : i32
    %11 = arith.cmpi ne, %10, %c0_i32_9 : i32
    scf.if %11 {
      %c0_10 = arith.constant 0 : index
      %c0_11 = arith.constant 0 : index
      %12 = vector.load %arg9[%c0_10, %c0_11] : memref<192x32xf32, #tpu.memory_space<vmem>>, vector<192x32xf32>
      %c0_12 = arith.constant 0 : index
      %c0_13 = arith.constant 0 : index
      %13 = vector.load %arg4[%c0_12, %c0_13] : memref<32x32xf32, #tpu.memory_space<vmem>>, vector<32x32xf32>
      %cst_14 = arith.constant dense<0.000000e+00> : vector<192x32xf32>
      %14 = tpu.matmul %12, %13, %cst_14 {dimension_numbers = #tpu.dot_dimension_numbers<[1], [0], [0], [1], [0, 0, 1, 1], [], []>} : vector<192x32xf32>, vector<32x32xf32>, vector<192x32xf32> -> vector<192x32xf32>
      %c0_15 = arith.constant 0 : index
      %c0_16 = arith.constant 0 : index
      %15 = vector.load %arg5[%c0_15, %c0_16] : memref<1x32xf32, #tpu.memory_space<vmem>>, vector<1x32xf32>
      %16 = vector.broadcast %15 : vector<1x32xf32> to vector<192x32xf32>
      %17 = arith.addf %14, %16 : vector<192x32xf32>
      %cst_17 = arith.constant 0.000000e+00 : f32
      %18 = vector.broadcast %cst_17 : f32 to vector<192x32xf32>
      %19 = arith.maximumf %17, %18 : vector<192x32xf32>
      %20 = vector.broadcast %cst_17 : f32 to vector<192x32xf32>
      %21 = arith.subf %17, %20 : vector<192x32xf32>
      %22 = arith.cmpf one, %21, %21 : vector<192x32xf32>
      %23 = vector.broadcast %cst_17 : f32 to vector<192x32xf32>
      %24 = arith.addf %17, %23 : vector<192x32xf32>
      %25 = math.absf %21 : vector<192x32xf32>
      %cst_18 = arith.constant 0.000000e+00 : f32
      %26 = vector.broadcast %cst_18 : f32 to vector<192x32xf32>
      %27 = arith.subf %26, %25 : vector<192x32xf32>
      %28 = math.exp %27 : vector<192x32xf32>
      %29 = math.log1p %28 : vector<192x32xf32>
      %30 = arith.addf %19, %29 : vector<192x32xf32>
      %31 = arith.select %22, %24, %30 : vector<192x32xi1>, vector<192x32xf32>
      %c0_19 = arith.constant 0 : index
      %c0_20 = arith.constant 0 : index
      %32 = vector.load %arg6[%c0_19, %c0_20] : memref<32x128xf32, #tpu.memory_space<vmem>>, vector<32x128xf32>
      %cst_21 = arith.constant dense<0.000000e+00> : vector<192x128xf32>
      %33 = tpu.matmul %31, %32, %cst_21 {dimension_numbers = #tpu.dot_dimension_numbers<[1], [0], [0], [1], [0, 0, 1, 1], [], []>} : vector<192x32xf32>, vector<32x128xf32>, vector<192x128xf32> -> vector<192x128xf32>
      %c0_22 = arith.constant 0 : index
      %c0_23 = arith.constant 0 : index
      %34 = vector.load %arg7[%c0_22, %c0_23] : memref<1x128xf32, #tpu.memory_space<vmem>>, vector<1x128xf32>
      %35 = vector.broadcast %34 : vector<1x128xf32> to vector<192x128xf32>
      %36 = arith.addf %33, %35 : vector<192x128xf32>
      %37 = tpu.iota {dimensions = array<i32: 1>} : vector<192x128xi32>
      %c8_i32 = arith.constant 8 : i32
      %38 = vector.broadcast %c8_i32 : i32 to vector<192x128xi32>
      %39 = arith.cmpi sge, %37, %38 : vector<192x128xi32>
      %c16_i32 = arith.constant 16 : i32
      %40 = vector.broadcast %c16_i32 : i32 to vector<192x128xi32>
      %41 = arith.cmpi slt, %37, %40 : vector<192x128xi32>
      %42 = arith.andi %39, %41 : vector<192x128xi1>
      %cst_24 = arith.constant -5.000000e+00 : f32
      %cst_25 = arith.constant 5.000000e+00 : f32
      %43 = vector.broadcast %cst_24 : f32 to vector<192x128xf32>
      %44 = arith.maximumf %43, %36 : vector<192x128xf32>
      %45 = vector.broadcast %cst_25 : f32 to vector<192x128xf32>
      %46 = arith.minimumf %45, %44 : vector<192x128xf32>
      %47 = math.exp %46 : vector<192x128xf32>
      %48 = arith.select %42, %47, %36 : vector<192x128xi1>, vector<192x128xf32>
      %c0_26 = arith.constant 0 : index
      %c0_27 = arith.constant 0 : index
      %49 = vector.load %arg8[%c0_26, %c0_27] : memref<192x128xf32, #tpu.memory_space<vmem>>, vector<192x128xf32>
      tpu.vector_store %arg8[%c0_26, %c0_27], %48 {strides = array<i32>} : memref<192x128xf32, #tpu.memory_space<vmem>>, vector<192x128xf32>,
    } else {
    }
    return
  }
  func.func @transform_0(%arg0: i32, %arg1: i32) -> (i32, i32) {
    %c0_i32 = arith.constant 0 : i32
    return %arg0, %arg1 : i32, i32
  }
  func.func @transform_1(%arg0: i32, %arg1: i32) -> (i32, i32) {
    %c0_i32 = arith.constant 0 : i32
    %c0_i32_0 = arith.constant 0 : i32
    return %arg1, %c0_i32 : i32, i32
  }
  func.func @transform_2(%arg0: i32, %arg1: i32) -> (i32, i32) {
    %c0_i32 = arith.constant 0 : i32
    %c0_i32_0 = arith.constant 0 : i32
    %c0_i32_1 = arith.constant 0 : i32
    return %c0_i32, %c0_i32_0 : i32, i32
  }
  func.func @transform_3(%arg0: i32, %arg1: i32) -> (i32, i32) {
    %c0_i32 = arith.constant 0 : i32
    %c0_i32_0 = arith.constant 0 : i32
    %c0_i32_1 = arith.constant 0 : i32
    return %c0_i32, %c0_i32_0 : i32, i32
  }
  func.func @transform_4(%arg0: i32, %arg1: i32) -> (i32, i32) {
    %c0_i32 = arith.constant 0 : i32
    %c0_i32_0 = arith.constant 0 : i32
    %c0_i32_1 = arith.constant 0 : i32
    return %c0_i32, %c0_i32_0 : i32, i32
  }
  func.func @transform_5(%arg0: i32, %arg1: i32) -> (i32, i32) {
    %c0_i32 = arith.constant 0 : i32
    %c0_i32_0 = arith.constant 0 : i32
    %c0_i32_1 = arith.constant 0 : i32
    return %c0_i32, %c0_i32_0 : i32, i32
  }
  func.func @transform_6(%arg0: i32, %arg1: i32) -> (i32, i32) {
    %c0_i32 = arith.constant 0 : i32
    %c0_i32_0 = arith.constant 0 : i32
    return %arg0, %c0_i32 : i32, i32
  }
}

</mosaic_0001>

<bundles_post_ra>
// kernel: tpu_custom_call.1
= control target key start
LH: loop header
LB: loop body
LE: loop exit
PB: predicated region body
PF: predicated region fallthrough
CT: control target
= control target key end

     0   :  { %11 = vsyncpa [#allocation4], 0  ;;  %s3042_s0 = inlined_call_operand.hbm [shape: bf16[192,256], index: 0, kind: input, shape index: {}]   ;;  %s3043_s1 = inlined_call_operand.vmem [shape: bf16[256,32], index: 1, kind: input, shape index: {}]   ;;  %s3044_s2 = inlined_call_operand.vmem [shape: f32[32,32], index: 2, kind: input, shape index: {}]   ;;  %s3045_s3 = inlined_call_operand.vmem [shape: f32[1,32], index: 3, kind: input, shape index: {}]   ;;  %s3046_s4 = inlined_call_operand.vmem [shape: f32[32,128], index: 4, kind: input, shape index: {}]   ;;  %s3047_s5 = inlined_call_operand.vmem [shape: f32[1,128], index: 5, kind: input, shape index: {}]   ;;  %s3048_s6 = inlined_call_operand.hbm [shape: f32[192,128], index: 6, kind: output, shape index: {}]  }
   0x1   :  { %12 = vsyncpa [#allocation5], 0  ;;  %s2314_s21 = smov [#allocation3]   ;;  %s2266_s25 = scalar_lea.hbm %s3042_s0, 3072 }
   0x2   :  { %s18_s22 = sshll.u32 %s2314_s21, 4  ;;  %p2267_p0 = scmp.ne.s32.totalorder %s3042_s0, %s2266_s25  ;;  %s19_s22 = int_to_ptr.vmem [resolvable:$true] %s18_s22 }
   0x3   :  { %p2270_p1 = scmp.lt.u32.totalorder %s2266_s25, %s3042_s0 }
   0x5   :  { %p2272_p2 = pnand %p2270_p1, %p2267_p0 }
   0x7   :  { %2275 = shalt.err (!%p2272_p2)
}
   0x8   :  { %s2276_s30 = scalar_lea.vmem %s19_s22, 3072  ;;  %p2281_p4 = scmp.lt.s32.totalorder %s19_s22, %s19_s22 }
   0x9   :  { %p2277_p3 = scmp.ne.s32.totalorder %s19_s22, %s2276_s30  ;;  %p2282_p5 = scmp.lt.s32.totalorder %s2276_s30, %s2276_s30 }
   0xb   :  { %p2283_p6 = por %p2282_p5, %p2281_p4 }
   0xd   :  { %p2284_p7 = pnand %p2283_p6, %p2277_p3 }
   0xf   :  { %2287 = shalt.err (!%p2284_p7)
}
  0x10   :  { %s2315_s7 = smov 128   ;;  %s2316_s8 = smov 8  }
  0x11   :  { %24 = dma.hbm_to_vmem [thread:$0]  %s3042_s0, 3072, %s19_s22, [#allocation4], %s2315_s7, %s2315_s7, %s2316_s8  }
  0x12   :  { %2310 = dma.done.wait [#allocation4], 3072  }
  0x13   :  { %2311 = vsyncadd [#allocation4], 4294964224  ;;  %v2070_v0 = vld [vmem:[%s3043_s1 + $0x40] sm:$0xff]   ;;  %v2072_v2 = vld [vmem:[%s3043_s1 + $0x48] sm:$0xff]   ;;  %vm43_vm0 = vcmask 261120   ;;  %v2317_v39 = vmov 0.0  }
  0x14   :  { %v2071_v1 = vld [vmem:[%s3043_s1] sm:$0xff]   ;;  %1817 = vmatprep.subr.bf16.mxu0 %v2070_v0  ;;  %v2073_v3 = vld [vmem:[%s3043_s1 + $0x8] sm:$0xff]   ;;  %v2074_v4 = vld [vmem:[%s3043_s1 + $0x50] sm:$0xff]   ;;  %44 = vst.msk [vmem:[#allocation2] sm:$0xff] %vm43_vm0, %v2317_v39 }
  0x15   :  { %1818 = vmatpush3.bf16.msra.mxu0 %v2071_v1  ;;  %v2075_v5 = vld [vmem:[%s3043_s1 + $0x10] sm:$0xff]   ;;  %v2076_v6 = vld [vmem:[%s3043_s1 + $0x58] sm:$0xff]   ;;  %v2078_v8 = vld [vmem:[%s3043_s1 + $0x60] sm:$0xff]   ;;  %45 = vst.msk [vmem:[#allocation2 + $0x8] sm:$0xff] %vm43_vm0, %v2317_v39 }
  0x16   :  { %1819 = vmatprep.subr.bf16.mxu0 %v2072_v2  ;;  %v2077_v7 = vld [vmem:[%s3043_s1 + $0x18] sm:$0xff]   ;;  %v2079_v9 = vld [vmem:[%s3043_s1 + $0x20] sm:$0xff]   ;;  %v2080_v10 = vld [vmem:[%s3043_s1 + $0x68] sm:$0xff]   ;;  %46 = vst.msk [vmem:[#allocation2 + $0x10] sm:$0xff] %vm43_vm0, %v2317_v39 }
  0x17   :  { %v2088_v11 = vld [vmem:[#allocation3 + $0x4] ss:$8 sps:$4 sm:$0xff]   ;;  %v2082_v13 = vld [vmem:[%s3043_s1 + $0x70] sm:$0xff]   ;;  %v2084_v15 = vld [vmem:[%s3043_s1 + $0x78] sm:$0xff]   ;;  %47 = vst.msk [vmem:[#allocation2 + $0x18] sm:$0xff] %vm43_vm0, %v2317_v39 }
  0x18   :  { %v2081_v12 = vld [vmem:[%s3043_s1 + $0x28] sm:$0xff]   ;;  %396 = vmatprep.mubr.bf16.mxu0 %v2088_v11  ;;  %v2083_v14 = vld [vmem:[%s3043_s1 + $0x30] sm:$0xff]   ;;  %v2085_v16 = vld [vmem:[%s3043_s1 + $0x38] sm:$0xff]   ;;  %48 = vst.msk [vmem:[#allocation2 + $0x20] sm:$0xff] %vm43_vm0, %v2317_v39 }
  0x19   :  { %1820 = vmatpush3.bf16.msra.mxu0 %v2073_v3  ;;  %v2086_v17 = vld [vmem:[#allocation3] ss:$8 sps:$4 sm:$0xff]   ;;  %v2089_v18 = vld [vmem:[#allocation3 + $0x14] ss:$8 sps:$4 sm:$0xff]   ;;  %v2091_v19 = vld [vmem:[#allocation3 + $0x10] ss:$8 sps:$4 sm:$0xff]  }
  0x1a   :  { %1821 = vmatprep.subr.bf16.mxu0 %v2074_v4  ;;  %v2092_v20 = vld [vmem:[#allocation3 + $0x24] ss:$8 sps:$4 sm:$0xff]   ;;  %v2094_v21 = vld [vmem:[#allocation3 + $0x20] ss:$8 sps:$4 sm:$0xff]   ;;  %v2095_v22 = vld [vmem:[#allocation3 + $0x34] ss:$8 sps:$4 sm:$0xff]  }
  0x1b   :  { %v2097_v23 = vld [vmem:[#allocation3 + $0x30] ss:$8 sps:$4 sm:$0xff]   ;;  %v2098_v24 = vld [vmem:[#allocation3 + $0x44] ss:$8 sps:$4 sm:$0xff]   ;;  %v2100_v25 = vld [vmem:[#allocation3 + $0x40] ss:$8 sps:$4 sm:$0xff]  }
  0x1c   :  { %v2101_v26 = vld [vmem:[#allocation3 + $0x54] ss:$8 sps:$4 sm:$0xff]   ;;  %v2103_v27 = vld [vmem:[#allocation3 + $0x50] ss:$8 sps:$4 sm:$0xff]   ;;  %v2104_v28 = vld [vmem:[#allocation3 + $0x64] ss:$8 sps:$4 sm:$0xff]  }
  0x1d   :  { %1822 = vmatpush3.bf16.msra.mxu0 %v2075_v5  ;;  %v2106_v29 = vld [vmem:[#allocation3 + $0x60] ss:$8 sps:$4 sm:$0xff]   ;;  %v2107_v30 = vld [vmem:[#allocation3 + $0x74] ss:$8 sps:$4 sm:$0xff]   ;;  %v2109_v31 = vld [vmem:[#allocation3 + $0x70] ss:$8 sps:$4 sm:$0xff]  }
  0x1e   :  { %1823 = vmatprep.subr.bf16.mxu0 %v2076_v6  ;;  %v2110_v32 = vld [vmem:[#allocation3 + $0x84] ss:$8 sps:$4 sm:$0xff]   ;;  %v2112_v33 = vld [vmem:[#allocation3 + $0x80] ss:$8 sps:$4 sm:$0xff]   ;;  %v2113_v34 = vld [vmem:[#allocation3 + $0x94] ss:$8 sps:$4 sm:$0xff]  }
  0x1f   :  { %v2115_v35 = vld [vmem:[#allocation3 + $0x90] ss:$8 sps:$4 sm:$0xff]   ;;  %v2116_v36 = vld [vmem:[#allocation3 + $0xa4] ss:$8 sps:$4 sm:$0xff]   ;;  %v2118_v37 = vld [vmem:[#allocation3 + $0xa0] ss:$8 sps:$4 sm:$0xff]  }
  0x20   :  { %v2119_v38 = vld [vmem:[#allocation3 + $0xb4] ss:$8 sps:$4 sm:$0xff]   ;;  %49 = vst.msk [vmem:[#allocation2 + $0x28] sm:$0xff] %vm43_vm0, %v2317_v39  ;;  %50 = vst.msk [vmem:[#allocation2 + $0x30] sm:$0xff] %vm43_vm0, %v2317_v39  ;;  %v2121_v40 = vld [vmem:[#allocation3 + $0xb0] ss:$8 sps:$4 sm:$0xff]  }
  0x21   :  { %1824 = vmatpush3.bf16.msra.mxu0 %v2077_v7  ;;  %51 = vst.msk [vmem:[#allocation2 + $0x38] sm:$0xff] %vm43_vm0, %v2317_v39  ;;  %52 = vst.msk [vmem:[#allocation2 + $0x40] sm:$0xff] %vm43_vm0, %v2317_v39  ;;  %v569_v41 = vld [vmem:[%s3044_s2] sm:$0xff]  ;;  %v570_v42 = vld [vmem:[%s3044_s2 + $0x8] sm:$0xff] }
  0x22   :  { %1825 = vmatprep.subr.bf16.mxu0 %v2078_v8  ;;  %53 = vst.msk [vmem:[#allocation2 + $0x48] sm:$0xff] %vm43_vm0, %v2317_v39  ;;  %54 = vst.msk [vmem:[#allocation2 + $0x50] sm:$0xff] %vm43_vm0, %v2317_v39  ;;  %v2049_v43 = vpack.c.bf16 %v570_v42, %v569_v41  ;;  %v571_v44 = vld [vmem:[%s3044_s2 + $0x10] sm:$0xff]  ;;  %v572_v45 = vld [vmem:[%s3044_s2 + $0x18] sm:$0xff] }
  0x23   :  { %55 = vst.msk [vmem:[#allocation2 + $0x58] sm:$0xff] %vm43_vm0, %v2317_v39  ;;  %56 = vst.msk [vmem:[#allocation2 + $0x60] sm:$0xff] %vm43_vm0, %v2317_v39  ;;  %v2053_v46 = vpack.c.bf16 %v572_v45, %v571_v44  ;;  %v68_v48 = vld [vmem:[#allocation2] sm:$0xff]  ;;  %v69_v52 = vld [vmem:[#allocation2 + $0x8] sm:$0xff] }
  0x24   :  { %57 = vst.msk [vmem:[#allocation2 + $0x68] sm:$0xff] %vm43_vm0, %v2317_v39  ;;  %58 = vst.msk [vmem:[#allocation2 + $0x70] sm:$0xff] %vm43_vm0, %v2317_v39  ;;  %2050 = vmatprep.subr.bf16.mxu1 %v2049_v43  ;;  %v70_v58 = vld [vmem:[#allocation2 + $0x10] sm:$0xff]  ;;  %v71_v62 = vld [vmem:[#allocation2 + $0x18] sm:$0xff] }
  0x25   :  { %1826 = vmatpush3.bf16.msra.mxu0 %v2079_v9  ;;  %59 = vst.msk [vmem:[#allocation2 + $0x78] sm:$0xff] %vm43_vm0, %v2317_v39  ;;  %60 = vst.msk [vmem:[#allocation2 + $0x80] sm:$0xff] %vm43_vm0, %v2317_v39  ;;  %2052 = vmatpush3.bf16.msra.mxu1 %v2049_v43  ;;  %v72_v6 = vld [vmem:[#allocation2 + $0x20] sm:$0xff] }
  0x26   :  { %1827 = vmatprep.subr.bf16.mxu0 %v2080_v10  ;;  %61 = vst.msk [vmem:[#allocation2 + $0x88] sm:$0xff] %vm43_vm0, %v2317_v39  ;;  %62 = vst.msk [vmem:[#allocation2 + $0x90] sm:$0xff] %vm43_vm0, %v2317_v39  ;;  %2054 = vmatprep.subr.bf16.mxu1 %v2053_v46 }
  0x27   :  { %63 = vst.msk [vmem:[#allocation2 + $0x98] sm:$0xff] %vm43_vm0, %v2317_v39  ;;  %64 = vst.msk [vmem:[#allocation2 + $0xa0] sm:$0xff] %vm43_vm0, %v2317_v39  ;;  %v73_v10 = vld [vmem:[#allocation2 + $0x28] sm:$0xff] }
  0x28   :  { %65 = vst.msk [vmem:[#allocation2 + $0xa8] sm:$0xff] %vm43_vm0, %v2317_v39  ;;  %66 = vst.msk [vmem:[#allocation2 + $0xb0] sm:$0xff] %vm43_vm0, %v2317_v39 }
  0x29   :  { %1828 = vmatpush3.bf16.msra.mxu0 %v2081_v12  ;;  %67 = vst.msk [vmem:[#allocation2 + $0xb8] sm:$0xff] %vm43_vm0, %v2317_v39  ;;  %2056 = vmatpush3.bf16.msra.mxu1 %v2053_v46  ;;  %v78_v42 = vld [vmem:[#allocation2 + $0x50] sm:$0xff] }
  0x2a   :  { %1829 = vmatprep.subr.bf16.mxu0 %v2082_v13  ;;  %v79_v46 = vld [vmem:[#allocation2 + $0x58] sm:$0xff] }
  0x2d   :  { %1830 = vmatpush3.bf16.msra.mxu0 %v2083_v14 }
  0x2e   :  { %1831 = vmatprep.subr.bf16.mxu0 %v2084_v15 }
  0x31   :  { %1832 = vmatpush3.bf16.msra.mxu0 %v2085_v16 }
  0x34   :  { %397 = vmatmul.mubr.bf16.vlgmr.msra.gmra.mrb[0].mxu0 %v2086_v17 }
  0x35   :  { %404 = vmatprep.mubr.bf16.mxu0 %v2089_v18  ;;  %v74_v18 = vld [vmem:[#allocation2 + $0x30] sm:$0xff] }
  0x3c   :  { %405 = vmatmul.mubr.bf16.gmra.mrb[4].mxu0 %v2091_v19 }
  0x3d   :  { %412 = vmatprep.mubr.bf16.mxu0 %v2092_v20 }
  0x44   :  { %413 = vmatmul.mubr.bf16.gmra.mrb[8].mxu0 %v2094_v21 }
  0x45   :  { %420 = vmatprep.mubr.bf16.mxu0 %v2095_v22  ;;  %v75_v22 = vld [vmem:[#allocation2 + $0x38] sm:$0xff] }
  0x4c   :  { %421 = vmatmul.mubr.bf16.gmra.mrb[12].mxu0 %v2097_v23 }
  0x4d   :  { %428 = vmatprep.mubr.bf16.mxu0 %v2098_v24 }
  0x54   :  { %429 = vmatmul.mubr.bf16.gmra.mrb[16].mxu0 %v2100_v25 }
  0x55   :  { %436 = vmatprep.mubr.bf16.mxu0 %v2101_v26 }
  0x5c   :  { %437 = vmatmul.mubr.bf16.gmra.mrb[20].mxu0 %v2103_v27 }
  0x5d   :  { %444 = vmatprep.mubr.bf16.mxu0 %v2104_v28 }
  0x64   :  { %445 = vmatmul.mubr.bf16.gmra.mrb[24].mxu0 %v2106_v29 }
  0x65   :  { %452 = vmatprep.mubr.bf16.mxu0 %v2107_v30  ;;  %v76_v30 = vld [vmem:[#allocation2 + $0x40] sm:$0xff] }
  0x6c   :  { %453 = vmatmul.mubr.bf16.gmra.mrb[28].mxu0 %v2109_v31 }
  0x6d   :  { %460 = vmatprep.mubr.bf16.mxu0 %v2110_v32 }
  0x74   :  { %461 = vmatmul.mubr.bf16.gmra.mrb[32].mxu0 %v2112_v33 }
  0x75   :  { %468 = vmatprep.mubr.bf16.mxu0 %v2113_v34  ;;  %v77_v34 = vld [vmem:[#allocation2 + $0x48] sm:$0xff] }
  0x7c   :  { %469 = vmatmul.mubr.bf16.gmra.mrb[36].mxu0 %v2115_v35 }
  0x7d   :  { %476 = vmatprep.mubr.bf16.mxu0 %v2116_v36 }
  0x84   :  { %477 = vmatmul.mubr.bf16.gmra.mrb[40].mxu0 %v2118_v37 }
  0x85   :  { %484 = vmatprep.mubr.bf16.mxu0 %v2119_v38 }
  0x8c   :  { %485 = vmatmul.mubr.bf16.gmra.mrb[44].mxu0 %v2121_v40 }
 0x107   :  { %v1833_v47 = vpop.f32.mrb[0].mxu0 }
 0x108   :  { %v1834_v49 = vpop.f32.mrb[1].mxu0 }
 0x109   :  { %v1835_v50 = vadd.f32 %v1834_v49, %v1833_v47  ;;  %v1836_v51 = vpop.f32.mrb[2].mxu0 }
 0x10a   :  { %v1837_v53 = vpop.f32.mrb[3].mxu0 }
 0x10b   :  { %v493_v54 = vadd.f32 %v1835_v50, %v68_v48  ;;  %v1838_v55 = vadd.f32 %v1837_v53, %v1836_v51 }
 0x10d   :  { %518 = vst.msk [vmem:[#allocation2] sm:$0xff] %vm43_vm0, %v493_v54  ;;  %v494_v56 = vadd.f32 %v1838_v55, %v69_v52  ;;  %v80_v54 = vld [vmem:[#allocation2 + $0x60] sm:$0xff] }
 0x10f   :  { %519 = vst.msk [vmem:[#allocation2 + $0x8] sm:$0xff] %vm43_vm0, %v494_v56  ;;  %v1839_v57 = vpop.f32.mrb[4].mxu0 }
 0x110   :  { %v1840_v59 = vpop.f32.mrb[5].mxu0 }
 0x111   :  { %v1841_v60 = vadd.f32 %v1840_v59, %v1839_v57  ;;  %v1842_v61 = vpop.f32.mrb[6].mxu0 }
 0x112   :  { %v1843_v63 = vpop.f32.mrb[7].mxu0 }
 0x113   :  { %v495_v0 = vadd.f32 %v1841_v60, %v70_v58  ;;  %v1844_v1 = vadd.f32 %v1843_v63, %v1842_v61  ;;  %v81_v58 = vld [vmem:[#allocation2 + $0x68] sm:$0xff] }
 0x114   :  { %v545_v2 = vld [vmem:[#allocation2] sm:$0xff] }
 0x115   :  { %520 = vst.msk [vmem:[#allocation2 + $0x10] sm:$0xff] %vm43_vm0, %v495_v0  ;;  %v496_v3 = vadd.f32 %v1844_v1, %v71_v62  ;;  %1969 = vmatprep.mubr.msk.f32.mxu1 %vm43_vm0, %v545_v2  ;;  %v82_v2 = vld [vmem:[#allocation2 + $0x70] sm:$0xff] }
 0x116   :  { %v546_v4 = vld [vmem:[#allocation2 + $0x8] sm:$0xff] }
 0x117   :  { %521 = vst.msk [vmem:[#allocation2 + $0x18] sm:$0xff] %vm43_vm0, %v496_v3  ;;  %v1845_v5 = vpop.f32.mrb[8].mxu0  ;;  %1970 = vmatmul.mubr.msk.f32.vlgmr.msra.gmra.mrb[0].mxu1 %vm43_vm0, %v546_v4 }
 0x118   :  { %v1846_v7 = vpop.f32.mrb[9].mxu0 }
 0x119   :  { %v1847_v8 = vadd.f32 %v1846_v7, %v1845_v5  ;;  %v1848_v9 = vpop.f32.mrb[10].mxu0 }
 0x11a   :  { %v1849_v11 = vpop.f32.mrb[11].mxu0 }
 0x11b   :  { %v497_v12 = vadd.f32 %v1847_v8, %v72_v6  ;;  %v1850_v13 = vadd.f32 %v1849_v11, %v1848_v9  ;;  %v83_v6 = vld [vmem:[#allocation2 + $0x78] sm:$0xff] }
 0x11c   :  { %v547_v14 = vld [vmem:[#allocation2 + $0x10] sm:$0xff] }
 0x11d   :  { %522 = vst.msk [vmem:[#allocation2 + $0x20] sm:$0xff] %vm43_vm0, %v497_v12  ;;  %v498_v15 = vadd.f32 %v1850_v13, %v73_v10  ;;  %1972 = vmatprep.mubr.msk.f32.mxu1 %vm43_vm0, %v547_v14  ;;  %v84_v14 = vld [vmem:[#allocation2 + $0x80] sm:$0xff] }
 0x11e   :  { %v548_v16 = vld [vmem:[#allocation2 + $0x18] sm:$0xff] }
 0x11f   :  { %523 = vst.msk [vmem:[#allocation2 + $0x28] sm:$0xff] %vm43_vm0, %v498_v15  ;;  %v1851_v17 = vpop.f32.mrb[12].mxu0  ;;  %1973 = vmatmul.mubr.msk.f32.gmra.mrb[2].mxu1 %vm43_vm0, %v548_v16 }
 0x120   :  { %v1852_v19 = vpop.f32.mrb[13].mxu0 }
 0x121   :  { %v1853_v20 = vadd.f32 %v1852_v19, %v1851_v17  ;;  %v1854_v21 = vpop.f32.mrb[14].mxu0 }
 0x122   :  { %v1855_v23 = vpop.f32.mrb[15].mxu0 }
 0x123   :  { %v499_v24 = vadd.f32 %v1853_v20, %v74_v18  ;;  %v1856_v25 = vadd.f32 %v1855_v23, %v1854_v21  ;;  %v85_v18 = vld [vmem:[#allocation2 + $0x88] sm:$0xff] }
 0x124   :  { %v549_v26 = vld [vmem:[#allocation2 + $0x20] sm:$0xff] }
 0x125   :  { %524 = vst.msk [vmem:[#allocation2 + $0x30] sm:$0xff] %vm43_vm0, %v499_v24  ;;  %v500_v27 = vadd.f32 %v1856_v25, %v75_v22  ;;  %1975 = vmatprep.mubr.msk.f32.mxu1 %vm43_vm0, %v549_v26  ;;  %v86_v26 = vld [vmem:[#allocation2 + $0x90] sm:$0xff] }
 0x126   :  { %v550_v28 = vld [vmem:[#allocation2 + $0x28] sm:$0xff] }
 0x127   :  { %525 = vst.msk [vmem:[#allocation2 + $0x38] sm:$0xff] %vm43_vm0, %v500_v27  ;;  %v1857_v29 = vpop.f32.mrb[16].mxu0  ;;  %1976 = vmatmul.mubr.msk.f32.gmra.mrb[4].mxu1 %vm43_vm0, %v550_v28 }
 0x128   :  { %v1858_v31 = vpop.f32.mrb[17].mxu0 }
 0x129   :  { %v1859_v32 = vadd.f32 %v1858_v31, %v1857_v29  ;;  %v1860_v33 = vpop.f32.mrb[18].mxu0 }
 0x12a   :  { %v1861_v35 = vpop.f32.mrb[19].mxu0 }
 0x12b   :  { %v501_v36 = vadd.f32 %v1859_v32, %v76_v30  ;;  %v1862_v37 = vadd.f32 %v1861_v35, %v1860_v33  ;;  %v87_v30 = vld [vmem:[#allocation2 + $0x98] sm:$0xff] }
 0x12c   :  { %v551_v38 = vld [vmem:[#allocation2 + $0x30] sm:$0xff] }
 0x12d   :  { %526 = vst.msk [vmem:[#allocation2 + $0x40] sm:$0xff] %vm43_vm0, %v501_v36  ;;  %v502_v39 = vadd.f32 %v1862_v37, %v77_v34  ;;  %1978 = vmatprep.mubr.msk.f32.mxu1 %vm43_vm0, %v551_v38  ;;  %v88_v38 = vld [vmem:[#allocation2 + $0xa0] sm:$0xff] }
 0x12e   :  { %v552_v40 = vld [vmem:[#allocation2 + $0x38] sm:$0xff] }
 0x12f   :  { %527 = vst.msk [vmem:[#allocation2 + $0x48] sm:$0xff] %vm43_vm0, %v502_v39  ;;  %v1863_v41 = vpop.f32.mrb[20].mxu0  ;;  %1979 = vmatmul.mubr.msk.f32.gmra.mrb[6].mxu1 %vm43_vm0, %v552_v40 }
 0x130   :  { %v1864_v43 = vpop.f32.mrb[21].mxu0 }
 0x131   :  { %v1865_v44 = vadd.f32 %v1864_v43, %v1863_v41  ;;  %v1866_v45 = vpop.f32.mrb[22].mxu0 }
 0x132   :  { %v1867_v47 = vpop.f32.mrb[23].mxu0 }
 0x133   :  { %v503_v48 = vadd.f32 %v1865_v44, %v78_v42  ;;  %v1868_v49 = vadd.f32 %v1867_v47, %v1866_v45  ;;  %v89_v42 = vld [vmem:[#allocation2 + $0xa8] sm:$0xff] }
 0x134   :  { %v553_v50 = vld [vmem:[#allocation2 + $0x40] sm:$0xff] }
 0x135   :  { %528 = vst.msk [vmem:[#allocation2 + $0x50] sm:$0xff] %vm43_vm0, %v503_v48  ;;  %v504_v51 = vadd.f32 %v1868_v49, %v79_v46  ;;  %1981 = vmatprep.mubr.msk.f32.mxu1 %vm43_vm0, %v553_v50  ;;  %v90_v50 = vld [vmem:[#allocation2 + $0xb0] sm:$0xff] }
 0x136   :  { %v554_v52 = vld [vmem:[#allocation2 + $0x48] sm:$0xff] }
 0x137   :  { %529 = vst.msk [vmem:[#allocation2 + $0x58] sm:$0xff] %vm43_vm0, %v504_v51  ;;  %v1869_v53 = vpop.f32.mrb[24].mxu0  ;;  %1982 = vmatmul.mubr.msk.f32.gmra.mrb[8].mxu1 %vm43_vm0, %v554_v52 }
 0x138   :  { %v1870_v55 = vpop.f32.mrb[25].mxu0 }
 0x139   :  { %v1871_v56 = vadd.f32 %v1870_v55, %v1869_v53  ;;  %v1872_v57 = vpop.f32.mrb[26].mxu0 }
 0x13a   :  { %v1873_v59 = vpop.f32.mrb[27].mxu0 }
 0x13b   :  { %v505_v60 = vadd.f32 %v1871_v56, %v80_v54  ;;  %v1874_v61 = vadd.f32 %v1873_v59, %v1872_v57  ;;  %v91_v54 = vld [vmem:[#allocation2 + $0xb8] sm:$0xff] }
 0x13c   :  { %v555_v62 = vld [vmem:[#allocation2 + $0x50] sm:$0xff] }
 0x13d   :  { %530 = vst.msk [vmem:[#allocation2 + $0x60] sm:$0xff] %vm43_vm0, %v505_v60  ;;  %v506_v63 = vadd.f32 %v1874_v61, %v81_v58  ;;  %1984 = vmatprep.mubr.msk.f32.mxu1 %vm43_vm0, %v555_v62 }
 0x13e   :  { %v556_v0 = vld [vmem:[#allocation2 + $0x58] sm:$0xff] }
 0x13f   :  { %531 = vst.msk [vmem:[#allocation2 + $0x68] sm:$0xff] %vm43_vm0, %v506_v63  ;;  %v1875_v1 = vpop.f32.mrb[28].mxu0  ;;  %1985 = vmatmul.mubr.msk.f32.gmra.mrb[10].mxu1 %vm43_vm0, %v556_v0  ;;  %v1269_v63 = vld [vmem:[%s3046_s4] sm:$0xff]  ;;  %v1270_v0 = vld [vmem:[%s3046_s4 + $0x8] sm:$0xff] }
 0x140   :  { %v1876_v3 = vpop.f32.mrb[29].mxu0 }
 0x141   :  { %v1877_v4 = vadd.f32 %v1876_v3, %v1875_v1  ;;  %v1878_v5 = vpop.f32.mrb[30].mxu0  ;;  %v2057_v1 = vpack.c.bf16 %v1270_v0, %v1269_v63  ;;  %v1272_v3 = vld [vmem:[%s3046_s4 + $0x18] sm:$0xff] }
 0x142   :  { %v1879_v7 = vpop.f32.mrb[31].mxu0 }
 0x143   :  { %v507_v8 = vadd.f32 %v1877_v4, %v82_v2  ;;  %v1880_v9 = vadd.f32 %v1879_v7, %v1878_v5  ;;  %2058 = vmatprep.subr.bf16.mxu1 %v2057_v1  ;;  %v1271_v2 = vld [vmem:[%s3046_s4 + $0x10] sm:$0xff]  ;;  %v2516_v5 = vld [vmem:[%s3045_s3] ss:$0 sm:$0xff] }
 0x144   :  { %v557_v10 = vld [vmem:[#allocation2 + $0x60] sm:$0xff]  ;;  %2060 = vmatpush3.bf16.msra.mxu1 %v2057_v1  ;;  %v2061_v4 = vpack.c.bf16 %v1272_v3, %v1271_v2 }
 0x145   :  { %532 = vst.msk [vmem:[#allocation2 + $0x70] sm:$0xff] %vm43_vm0, %v507_v8  ;;  %v508_v11 = vadd.f32 %v1880_v9, %v83_v6  ;;  %1987 = vmatprep.mubr.msk.f32.mxu1 %vm43_vm0, %v557_v10 }
 0x146   :  { %v558_v12 = vld [vmem:[#allocation2 + $0x68] sm:$0xff]  ;;  %2062 = vmatprep.subr.bf16.mxu1 %v2061_v4 }
 0x147   :  { %533 = vst.msk [vmem:[#allocation2 + $0x78] sm:$0xff] %vm43_vm0, %v508_v11  ;;  %v1881_v13 = vpop.f32.mrb[32].mxu0  ;;  %1988 = vmatmul.mubr.msk.f32.gmra.mrb[12].mxu1 %vm43_vm0, %v558_v12 }
 0x148   :  { %v1882_v15 = vpop.f32.mrb[33].mxu0  ;;  %2064 = vmatpush3.bf16.msra.mxu1 %v2061_v4 }
 0x149   :  { %v1883_v16 = vadd.f32 %v1882_v15, %v1881_v13  ;;  %v1884_v17 = vpop.f32.mrb[34].mxu0 }
 0x14a   :  { %v1885_v19 = vpop.f32.mrb[35].mxu0 }
 0x14b   :  { %v509_v20 = vadd.f32 %v1883_v16, %v84_v14  ;;  %v1886_v21 = vadd.f32 %v1885_v19, %v1884_v17 }
 0x14c   :  { %v559_v22 = vld [vmem:[#allocation2 + $0x70] sm:$0xff] }
 0x14d   :  { %534 = vst.msk [vmem:[#allocation2 + $0x80] sm:$0xff] %vm43_vm0, %v509_v20  ;;  %v510_v23 = vadd.f32 %v1886_v21, %v85_v18  ;;  %1990 = vmatprep.mubr.msk.f32.mxu1 %vm43_vm0, %v559_v22 }
 0x14e   :  { %v560_v24 = vld [vmem:[#allocation2 + $0x78] sm:$0xff] }
 0x14f   :  { %535 = vst.msk [vmem:[#allocation2 + $0x88] sm:$0xff] %vm43_vm0, %v510_v23  ;;  %v1887_v25 = vpop.f32.mrb[36].mxu0  ;;  %1991 = vmatmul.mubr.msk.f32.gmra.mrb[14].mxu1 %vm43_vm0, %v560_v24 }
 0x150   :  { %v1888_v27 = vpop.f32.mrb[37].mxu0 }
 0x151   :  { %v1889_v28 = vadd.f32 %v1888_v27, %v1887_v25  ;;  %v1890_v29 = vpop.f32.mrb[38].mxu0 }
 0x152   :  { %v1891_v31 = vpop.f32.mrb[39].mxu0 }
 0x153   :  { %v511_v32 = vadd.f32 %v1889_v28, %v86_v26  ;;  %v1892_v33 = vadd.f32 %v1891_v31, %v1890_v29 }
 0x154   :  { %v561_v34 = vld [vmem:[#allocation2 + $0x80] sm:$0xff] }
 0x155   :  { %536 = vst.msk [vmem:[#allocation2 + $0x90] sm:$0xff] %vm43_vm0, %v511_v32  ;;  %v512_v35 = vadd.f32 %v1892_v33, %v87_v30  ;;  %1993 = vmatprep.mubr.msk.f32.mxu1 %vm43_vm0, %v561_v34 }
 0x156   :  { %v562_v36 = vld [vmem:[#allocation2 + $0x88] sm:$0xff] }
 0x157   :  { %537 = vst.msk [vmem:[#allocation2 + $0x98] sm:$0xff] %vm43_vm0, %v512_v35  ;;  %v1893_v37 = vpop.f32.mrb[40].mxu0  ;;  %1994 = vmatmul.mubr.msk.f32.gmra.mrb[16].mxu1 %vm43_vm0, %v562_v36 }
 0x158   :  { %v1894_v39 = vpop.f32.mrb[41].mxu0 }
 0x159   :  { %v1895_v40 = vadd.f32 %v1894_v39, %v1893_v37  ;;  %v1896_v41 = vpop.f32.mrb[42].mxu0 }
 0x15a   :  { %v1897_v43 = vpop.f32.mrb[43].mxu0 }
 0x15b   :  { %v513_v44 = vadd.f32 %v1895_v40, %v88_v38  ;;  %v1898_v45 = vadd.f32 %v1897_v43, %v1896_v41 }
 0x15c   :  { %v563_v46 = vld [vmem:[#allocation2 + $0x90] sm:$0xff] }
 0x15d   :  { %538 = vst.msk [vmem:[#allocation2 + $0xa0] sm:$0xff] %vm43_vm0, %v513_v44  ;;  %v514_v47 = vadd.f32 %v1898_v45, %v89_v42  ;;  %1996 = vmatprep.mubr.msk.f32.mxu1 %vm43_vm0, %v563_v46 }
 0x15e   :  { %v564_v48 = vld [vmem:[#allocation2 + $0x98] sm:$0xff] }
 0x15f   :  { %539 = vst.msk [vmem:[#allocation2 + $0xa8] sm:$0xff] %vm43_vm0, %v514_v47  ;;  %v1899_v49 = vpop.f32.mrb[44].mxu0  ;;  %1997 = vmatmul.mubr.msk.f32.gmra.mrb[18].mxu1 %vm43_vm0, %v564_v48 }
 0x160   :  { %v1900_v51 = vpop.f32.mrb[45].mxu0 }
 0x161   :  { %v1901_v52 = vadd.f32 %v1900_v51, %v1899_v49  ;;  %v1902_v53 = vpop.f32.mrb[46].mxu0 }
 0x162   :  { %v1903_v55 = vpop.f32.mrb[47].mxu0 }
 0x163   :  { %v515_v56 = vadd.f32 %v1901_v52, %v90_v50  ;;  %v1904_v57 = vadd.f32 %v1903_v55, %v1902_v53 }
 0x164   :  { %v565_v58 = vld [vmem:[#allocation2 + $0xa0] sm:$0xff] }
 0x165   :  { %540 = vst.msk [vmem:[#allocation2 + $0xb0] sm:$0xff] %vm43_vm0, %v515_v56  ;;  %v516_v59 = vadd.f32 %v1904_v57, %v91_v54  ;;  %1999 = vmatprep.mubr.msk.f32.mxu1 %vm43_vm0, %v565_v58 }
 0x166   :  { %v566_v60 = vld [vmem:[#allocation2 + $0xa8] sm:$0xff] }
 0x167   :  { %541 = vst.msk [vmem:[#allocation2 + $0xb8] sm:$0xff] %vm43_vm0, %v516_v59  ;;  %2000 = vmatmul.mubr.msk.f32.gmra.mrb[20].mxu1 %vm43_vm0, %v566_v60 }
 0x16c   :  { %v567_v61 = vld [vmem:[#allocation2 + $0xb0] sm:$0xff] }
 0x16d   :  { %2002 = vmatprep.mubr.msk.f32.mxu1 %vm43_vm0, %v567_v61 }
 0x16e   :  { %v568_v62 = vld [vmem:[#allocation2 + $0xb8] sm:$0xff] }
 0x16f   :  { %2003 = vmatmul.mubr.msk.f32.gmra.mrb[22].mxu1 %vm43_vm0, %v568_v62 }
 0x1ea   :  { %v1971_v6 = vpop.f32.mrb[0].mxu1 }
 0x1eb   :  { %v2519_v7 = vadd.f32 %v1971_v6, %v2516_v5  ;;  %v718_v8 = vpop.f32.mrb[1].mxu1 }
 0x1ec   :  { %v2522_v9 = vadd.f32 %v2516_v5, %v718_v8 }
 0x1ed   :  { %v910_v10 = vand.u32 2147483647, %v2519_v7  ;;  %v838_v56 = vmax.f32 %v2519_v7, 0.0  ;;  %vm862_vm1 = vcmp.ne.f32.partialorder %v2519_v7, %v2519_v7 }
 0x1ee   :  { %v909_v11 = vand.u32 2147483647, %v2522_v9  ;;  %v837_v60 = vmax.f32 %v2522_v9, 0.0  ;;  %vm861_vm3 = vcmp.ne.f32.partialorder %v2522_v9, %v2522_v9 }
 0x1ef   :  { %v934_v12 = vsub.f32 0.0, %v910_v10 }
 0x1f0   :  { %v933_v13 = vsub.f32 0.0, %v909_v11 }
 0x1f1   :  { %v959_v14 = vmul.f32 1.442695, %v934_v12 }
 0x1f2   :  { %v957_v15 = vmul.f32 1.442695, %v933_v13  ;;  %v1974_v16 = vpop.f32.mrb[2].mxu1 }
 0x1f3   :  { %2122 = vpow2.f32 %v959_v14  ;;  %v2527_v17 = vadd.f32 %v1974_v16, %v2516_v5  ;;  %v728_v18 = vpop.f32.mrb[3].mxu1 }
 0x1f4   :  { %2124 = vpow2.f32 %v957_v15  ;;  %v2530_v19 = vadd.f32 %v2516_v5, %v728_v18 }
 0x1f5   :  { %v912_v20 = vand.u32 2147483647, %v2527_v17  ;;  %vm864_vm7 = vcmp.ne.f32.partialorder %v2527_v17, %v2527_v17 }
 0x1f6   :  { %v911_v21 = vand.u32 2147483647, %v2530_v19  ;;  %vm863_vm8 = vcmp.ne.f32.partialorder %v2530_v19, %v2530_v19 }
 0x1f7   :  { %v936_v22 = vsub.f32 0.0, %v912_v20 }
 0x1f8   :  { %v935_v23 = vsub.f32 0.0, %v911_v21 }
 0x1f9   :  { %v963_v24 = vmul.f32 1.442695, %v936_v22 }
 0x1fa   :  { %v961_v25 = vmul.f32 1.442695, %v935_v23  ;;  %v1977_v26 = vpop.f32.mrb[4].mxu1 }
 0x1fb   :  { %2126 = vpow2.f32 %v963_v24  ;;  %v2535_v27 = vadd.f32 %v1977_v26, %v2516_v5  ;;  %v738_v28 = vpop.f32.mrb[5].mxu1 }
 0x1fc   :  { %2128 = vpow2.f32 %v961_v25  ;;  %v2538_v29 = vadd.f32 %v2516_v5, %v738_v28 }
 0x1fd   :  { %v2123_v30 = vpop.eup %2122  ;;  %v914_v31 = vand.u32 2147483647, %v2535_v27  ;;  %vm866_vm9 = vcmp.ne.f32.partialorder %v2535_v27, %v2535_v27 }
 0x1fe   :  { %v2125_v32 = vpop.eup %2124  ;;  %v1014_v33 = vadd.f32 1.0, %v2123_v30  ;;  %v913_v35 = vand.u32 2147483647, %v2538_v29  ;;  %v1017_v39 = vmul.f32 -0.5, %v2123_v30  ;;  %v1020_v47 = vand.u32 2147483647, %v2123_v30 }
 0x1ff   :  { %v938_v34 = vsub.f32 0.0, %v914_v31  ;;  %v1005_v36 = vadd.f32 1.0, %v2125_v32  ;;  %v1008_v45 = vmul.f32 -0.5, %v2125_v32  ;;  %v1011_v54 = vand.u32 2147483647, %v2125_v32 }
 0x200   :  { %2130 = vlog2.f32 %v1014_v33  ;;  %v937_v38 = vsub.f32 0.0, %v913_v35  ;;  %v1018_v50 = vadd.f32 1.0, %v1017_v39  ;;  %vm2556_vm2 = vcmp.lt.f32.partialorder %v1020_v47, 0.0004427343 }
 0x201   :  { %v967_v37 = vmul.f32 1.442695, %v938_v34  ;;  %2132 = vlog2.f32 %v1005_v36  ;;  %v1009_v58 = vadd.f32 1.0, %v1008_v45  ;;  %vm2566_vm4 = vcmp.lt.f32.partialorder %v1011_v54, 0.0004427343 }
 0x202   :  { %v1980_v40 = vpop.f32.mrb[6].mxu1  ;;  %v965_v41 = vmul.f32 1.442695, %v937_v38  ;;  %v1019_v63 = vmul.f32 %v2123_v30, %v1018_v50  ;;  %v839_v54 = vmax.f32 %v2530_v19, 0.0  ;;  %v841_v10 = vmax.f32 %v2538_v29, 0.0 }
 0x203   :  { %2134 = vpow2.f32 %v967_v37  ;;  %v2543_v42 = vadd.f32 %v1980_v40, %v2516_v5  ;;  %v748_v43 = vpop.f32.mrb[7].mxu1  ;;  %v1010_v14 = vmul.f32 %v2125_v32, %v1009_v58  ;;  %v840_v32 = vmax.f32 %v2527_v17, 0.0 }
 0x204   :  { %v2546_v44 = vadd.f32 %v2516_v5, %v748_v43  ;;  %2136 = vpow2.f32 %v965_v41  ;;  %vm865_vm12 = vcmp.ne.f32.partialorder %v2538_v29, %v2538_v29 }
 0x205   :  { %v2127_v46 = vpop.eup %2126  ;;  %v916_v48 = vand.u32 2147483647, %v2543_v42  ;;  %vm868_vm14 = vcmp.ne.f32.partialorder %v2543_v42, %v2543_v42 }
 0x206   :  { %v2549_v49 = vpop.eup %2128  ;;  %v915_v51 = vand.u32 2147483647, %v2546_v44  ;;  %v1032_v52 = vadd.f32 1.0, %v2127_v46  ;;  %v1035_v61 = vmul.f32 -0.5, %v2127_v46  ;;  %v1038_v21 = vand.u32 2147483647, %v2127_v46 }
 0x207   :  { %v940_v53 = vsub.f32 0.0, %v916_v48  ;;  %v1023_v55 = vadd.f32 1.0, %v2549_v49  ;;  %v1026_v11 = vmul.f32 -0.5, %v2549_v49  ;;  %v1029_v34 = vand.u32 2147483647, %v2549_v49 }
 0x208   :  { %v939_v57 = vsub.f32 0.0, %v915_v51  ;;  %2138 = vlog2.f32 %v1032_v52  ;;  %v1036_v20 = vadd.f32 1.0, %v1035_v61  ;;  %vm2592_vm5 = vcmp.lt.f32.partialorder %v1038_v21, 0.0004427343 }
 0x209   :  { %2140 = vlog2.f32 %v1023_v55  ;;  %v971_v0 = vmul.f32 1.442695, %v940_v53  ;;  %v1027_v30 = vadd.f32 1.0, %v1026_v11  ;;  %vm1030_vm6 = vcmp.lt.f32.partialorder %v1029_v34, 0.0004427343 }
 0x20a   :  { %v2131_v62 = vpop.eup %2130  ;;  %v969_v1 = vmul.f32 1.442695, %v939_v57  ;;  %v1983_v2 = vpop.f32.mrb[8].mxu1  ;;  %v1037_v37 = vmul.f32 %v2127_v46, %v1036_v20  ;;  %vm867_vm13 = vcmp.ne.f32.partialorder %v2546_v44, %v2546_v44 }
 0x20b   :  { %v2133_v3 = vpop.eup %2132  ;;  %v1016_v4 = vmul.f32 0.6931472, %v2131_v62  ;;  %v2564_v6 = vadd.f32 %v1983_v2, %v2516_v5  ;;  %v758_v8 = vpop.f32.mrb[9].mxu1  ;;  %v1028_v48 = vmul.f32 %v2549_v49, %v1027_v30 }
 0x20c   :  { %2142 = vpow2.f32 %v969_v1  ;;  %v2572_v12 = vadd.f32 %v2516_v5, %v758_v8  ;;  %v1007_v13 = vmul.f32 0.6931472, %v2133_v3 }
 0x20d   :  { %v2574_v15 = vpop.eup %2134  ;;  %v1022_v16 = vsel %vm2556_vm2, %v1019_v63, %v1016_v4  ;;  %v918_v18 = vand.u32 2147483647, %v2564_v6  ;;  %2144 = vpow2.f32 %v971_v0  ;;  %v842_v0 = vmax.f32 %v2535_v27, 0.0 }
 0x20e   :  { %v1222_v22 = vadd.f32 %v1022_v16, %v838_v56  ;;  %v917_v23 = vand.u32 2147483647, %v2572_v12  ;;  %v1013_v24 = vsel %vm2566_vm4, %v1010_v14, %v1007_v13  ;;  %v2582_v25 = vpop.eup %2136  ;;  %v1050_v31 = vadd.f32 1.0, %v2574_v15 }
 0x20f   :  { %v942_v26 = vsub.f32 0.0, %v918_v18  ;;  %v1221_v28 = vadd.f32 %v1013_v24, %v837_v60  ;;  %v1041_v35 = vadd.f32 1.0, %v2582_v25  ;;  %v1044_v51 = vmul.f32 -0.5, %v2582_v25 }
 0x210   :  { %v941_v33 = vsub.f32 0.0, %v917_v23  ;;  %2146 = vlog2.f32 %v1050_v31  ;;  %v1246_v45 = vsel %vm862_vm1, %v2519_v7, %v1222_v22  ;;  %v1053_v7 = vmul.f32 -0.5, %v2574_v15 }
 0x211   :  { %v1245_v36 = vsel %vm861_vm3, %v2522_v9, %v1221_v28  ;;  %v975_v40 = vmul.f32 1.442695, %v942_v26  ;;  %2148 = vlog2.f32 %v1041_v35  ;;  %v1045_v61 = vadd.f32 1.0, %v1044_v51 }
 0x212   :  { %v2139_v39 = vpop.eup %2138  ;;  %v973_v41 = vmul.f32 1.442695, %v941_v33  ;;  %v1986_v43 = vpop.f32.mrb[10].mxu1  ;;  %2013 = vmatprep.mubr.msk.f32.mxu1 %vm43_vm0, %v1245_v36  ;;  %v1054_v2 = vadd.f32 1.0, %v1053_v7  ;;  %v1056_v8 = vand.u32 2147483647, %v2574_v15  ;;  %vm870_vm2 = vcmp.ne.f32.partialorder %v2564_v6, %v2564_v6 }
 0x213   :  { %v2141_v47 = vpop.eup %2140  ;;  %v2602_v9 = vadd.f32 %v1986_v43, %v2516_v5  ;;  %v768_v46 = vpop.f32.mrb[11].mxu1  ;;  %2014 = vmatmul.mubr.msk.f32.vlgmr.msra.gmra.mrb[24].mxu1 %vm43_vm0, %v1246_v45  ;;  %v1034_v50 = vmul.f32 0.6931472, %v2139_v39  ;;  %v1047_v16 = vand.u32 2147483647, %v2582_v25  ;;  %v1046_v21 = vmul.f32 %v2582_v25, %v1045_v61 }
 0x214   :  { %2150 = vpow2.f32 %v973_v41  ;;  %v2608_v52 = vadd.f32 %v2516_v5, %v768_v46  ;;  %v1025_v53 = vmul.f32 0.6931472, %v2141_v47  ;;  %v1055_v28 = vmul.f32 %v2574_v15, %v1054_v2 }
 0x215   :  { %v920_v55 = vand.u32 2147483647, %v2602_v9  ;;  %v1040_v56 = vsel %vm2592_vm5, %v1037_v37, %v1034_v50  ;;  %2152 = vpow2.f32 %v975_v40  ;;  %vm1057_vm10 = vcmp.lt.f32.partialorder %v1056_v8, 0.0004427343 }
 0x216   :  { %v2615_v57 = vpop.eup %2142  ;;  %v919_v49 = vand.u32 2147483647, %v2608_v52  ;;  %v1031_v58 = vsel %vm1030_vm6, %v1028_v48, %v1025_v53  ;;  %v1224_v59 = vadd.f32 %v1040_v56, %v840_v32  ;;  %vm1048_vm11 = vcmp.lt.f32.partialorder %v1047_v16, 0.0004427343 }
 0x217   :  { %v1223_v60 = vadd.f32 %v1031_v58, %v839_v54  ;;  %v1059_v62 = vadd.f32 1.0, %v2615_v57  ;;  %v2621_v63 = vpop.eup %2144  ;;  %v944_v3 = vsub.f32 0.0, %v920_v55  ;;  %v1062_v22 = vmul.f32 -0.5, %v2615_v57 }
 0x218   :  { %v943_v1 = vsub.f32 0.0, %v919_v49  ;;  %v1248_v14 = vsel %vm864_vm7, %v2527_v17, %v1224_v59  ;;  %v1068_v23 = vadd.f32 1.0, %v2621_v63  ;;  %v1071_v40 = vmul.f32 -0.5, %v2621_v63 }
 0x219   :  { %v1247_v4 = vsel %vm863_vm8, %v2530_v19, %v1223_v60  ;;  %2154 = vlog2.f32 %v1059_v62  ;;  %v979_v30 = vmul.f32 1.442695, %v944_v3  ;;  %v1063_v37 = vadd.f32 1.0, %v1062_v22 }
 0x21a   :  { %v977_v11 = vmul.f32 1.442695, %v943_v1  ;;  %v1989_v13 = vpop.f32.mrb[12].mxu1  ;;  %2016 = vmatprep.mubr.msk.f32.mxu1 %vm43_vm0, %v1247_v4  ;;  %v2147_v19 = vpop.eup %2146  ;;  %v844_v43 = vmax.f32 %v2543_v42, 0.0  ;;  %v843_v45 = vmax.f32 %v2546_v44, 0.0  ;;  %v1072_v59 = vadd.f32 1.0, %v1071_v40 }
 0x21b   :  { %v2638_v18 = vadd.f32 %v1989_v13, %v2516_v5  ;;  %v778_v20 = vpop.f32.mrb[13].mxu1  ;;  %2017 = vmatmul.mubr.msk.f32.gmra.mrb[26].mxu1 %vm43_vm0, %v1248_v14  ;;  %v2149_v24 = vpop.eup %2148  ;;  %v1052_v26 = vmul.f32 0.6931472, %v2147_v19  ;;  %v1065_v47 = vand.u32 2147483647, %v2615_v57  ;;  %v1064_v58 = vmul.f32 %v2615_v57, %v1063_v37 }
 0x21c   :  { %2156 = vpow2.f32 %v977_v11  ;;  %v2645_v17 = vadd.f32 %v2516_v5, %v778_v20  ;;  %v1043_v31 = vmul.f32 0.6931472, %v2149_v24  ;;  %v1074_v60 = vand.u32 2147483647, %v2621_v63 }
 0x21d   :  { %2158 = vlog2.f32 %v1068_v23  ;;  %v922_v25 = vand.u32 2147483647, %v2638_v18  ;;  %v1058_v34 = vsel %vm1057_vm10, %v1055_v28, %v1052_v26  ;;  %vm1066_vm15 = vcmp.lt.f32.partialorder %v1065_v47, 0.0004427343 }
 0x21e   :  { %v2648_v32 = vpop.eup %2150  ;;  %v921_v33 = vand.u32 2147483647, %v2645_v17  ;;  %v1049_v35 = vsel %vm1048_vm11, %v1046_v21, %v1043_v31  ;;  %v1226_v36 = vadd.f32 %v1058_v34, %v842_v0  ;;  %2160 = vpow2.f32 %v979_v30 }
 0x21f   :  { %v2654_v38 = vpop.eup %2152  ;;  %v1225_v39 = vadd.f32 %v1049_v35, %v841_v10  ;;  %v1077_v41 = vadd.f32 1.0, %v2648_v32  ;;  %v946_v46 = vsub.f32 0.0, %v922_v25  ;;  %v1080_v61 = vmul.f32 -0.5, %v2648_v32 }
 0x220   :  { %v945_v15 = vsub.f32 0.0, %v921_v33  ;;  %v1250_v55 = vsel %vm866_vm9, %v2535_v27, %v1226_v36  ;;  %v1086_v56 = vadd.f32 1.0, %v2654_v38  ;;  %v846_v62 = vmax.f32 %v2564_v6, 0.0 }
 0x221   :  { %v1249_v50 = vsel %vm865_vm12, %v2538_v29, %v1225_v39  ;;  %2162 = vlog2.f32 %v1077_v41  ;;  %v983_v0 = vmul.f32 1.442695, %v946_v46  ;;  %v1089_v8 = vmul.f32 -0.5, %v2654_v38 }
 0x222   :  { %v1992_v48 = vpop.f32.mrb[14].mxu1  ;;  %v981_v53 = vmul.f32 1.442695, %v945_v15  ;;  %2019 = vmatprep.mubr.msk.f32.mxu1 %vm43_vm0, %v1249_v50  ;;  %2164 = vlog2.f32 %v1086_v56  ;;  %v1073_v13 = vmul.f32 %v2621_v63, %v1072_v59  ;;  %v845_v16 = vmax.f32 %v2572_v12, 0.0 }
 0x223   :  { %v2155_v51 = vpop.eup %2154  ;;  %v2665_v7 = vadd.f32 %v1992_v48, %v2516_v5  ;;  %v788_v54 = vpop.f32.mrb[15].mxu1  ;;  %2020 = vmatmul.mubr.msk.f32.gmra.mrb[28].mxu1 %vm43_vm0, %v1250_v55  ;;  %vm1075_vm1 = vcmp.lt.f32.partialorder %v1074_v60, 0.0004427343  ;;  %v1081_v20 = vadd.f32 1.0, %v1080_v61  ;;  %v1083_v24 = vand.u32 2147483647, %v2648_v32 }
 0x224   :  { %v2674_v29 = vadd.f32 %v2516_v5, %v788_v54  ;;  %v1061_v49 = vmul.f32 0.6931472, %v2155_v51  ;;  %2166 = vpow2.f32 %v981_v53  ;;  %v1090_v31 = vadd.f32 1.0, %v1089_v8 }
 0x225   :  { %v924_v57 = vand.u32 2147483647, %v2665_v7  ;;  %v847_v33 = vmax.f32 %v2608_v52, 0.0  ;;  %v1082_v15 = vmul.f32 %v2648_v32, %v1081_v20  ;;  %v1092_v39 = vand.u32 2147483647, %v2654_v38 }
 0x226   :  { %v2682_v27 = vpop.eup %2156  ;;  %v923_v1 = vand.u32 2147483647, %v2674_v29  ;;  %v1067_v2 = vsel %vm1066_vm15, %v1064_v58, %v1061_v49  ;;  %vm1084_vm3 = vcmp.lt.f32.partialorder %v1083_v24, 0.0004427343  ;;  %v1091_v46 = vmul.f32 %v2654_v38, %v1090_v31 }
 0x227   :  { %v2159_v3 = vpop.eup %2158  ;;  %v1227_v4 = vadd.f32 %v1067_v2, %v843_v45  ;;  %v1095_v14 = vadd.f32 1.0, %v2682_v27  ;;  %v948_v26 = vsub.f32 0.0, %v924_v57  ;;  %v1098_v35 = vmul.f32 -0.5, %v2682_v27 }
 0x228   :  { %v947_v10 = vsub.f32 0.0, %v923_v1  ;;  %v1070_v11 = vmul.f32 0.6931472, %v2159_v3  ;;  %v2697_v63 = vpop.eup %2160  ;;  %v1101_v51 = vand.u32 2147483647, %v2682_v27  ;;  %vm869_vm4 = vcmp.ne.f32.partialorder %v2572_v12, %v2572_v12 }
 0x229   :  { %v1251_v19 = vsel %vm867_vm13, %v2546_v44, %v1227_v4  ;;  %2168 = vlog2.f32 %v1095_v14  ;;  %v848_v44 = vmax.f32 %v2602_v9, 0.0  ;;  %v987_v45 = vmul.f32 1.442695, %v948_v26 }
 0x22a   :  { %v985_v21 = vmul.f32 1.442695, %v947_v10  ;;  %v1995_v22 = vpop.f32.mrb[16].mxu1  ;;  %2022 = vmatprep.mubr.msk.f32.mxu1 %vm43_vm0, %v1251_v19  ;;  %v1076_v23 = vsel %vm1075_vm1, %v1073_v13, %v1070_v11  ;;  %2170 = vpow2.f32 %v983_v0  ;;  %v1099_v50 = vadd.f32 1.0, %v1098_v35 }
 0x22b   :  { %v798_v28 = vpop.f32.mrb[17].mxu1  ;;  %v1228_v30 = vadd.f32 %v1076_v23, %v844_v43  ;;  %v2163_v25 = vpop.eup %2162  ;;  %v2714_v40 = vadd.f32 %v1995_v22, %v2516_v5  ;;  %vm1093_vm5 = vcmp.lt.f32.partialorder %v1092_v39, 0.0004427343  ;;  %v850_v55 = vmax.f32 %v2638_v18, 0.0 }
 0x22c   :  { %v2702_v34 = vadd.f32 %v2516_v5, %v798_v28  ;;  %v1079_v37 = vmul.f32 0.6931472, %v2163_v25  ;;  %2172 = vpow2.f32 %v985_v21  ;;  %v2165_v43 = vpop.eup %2164  ;;  %v1107_v0 = vmul.f32 -0.5, %v2697_v63 }
 0x22d   :  { %v1252_v36 = vsel %vm868_vm14, %v2543_v42, %v1228_v30  ;;  %v1104_v42 = vadd.f32 1.0, %v2697_v63  ;;  %v1088_v32 = vmul.f32 0.6931472, %v2165_v43  ;;  %v926_v56 = vand.u32 2147483647, %v2714_v40 }
 0x22e   :  { %v925_v41 = vand.u32 2147483647, %v2702_v34  ;;  %2023 = vmatmul.mubr.msk.f32.gmra.mrb[30].mxu1 %vm43_vm0, %v1252_v36  ;;  %v1085_v47 = vsel %vm1084_vm3, %v1082_v15, %v1079_v37  ;;  %v2721_v53 = vpop.eup %2166  ;;  %v1100_v3 = vmul.f32 %v2682_v27, %v1099_v50  ;;  %vm2739_vm6 = vcmp.lt.f32.partialorder %v1101_v51, 0.0004427343 }
 0x22f   :  { %v1229_v48 = vadd.f32 %v1085_v47, %v845_v16  ;;  %2174 = vlog2.f32 %v1104_v42  ;;  %v1094_v58 = vsel %vm1093_vm5, %v1091_v46, %v1088_v32  ;;  %v1113_v57 = vadd.f32 1.0, %v2721_v53 }
 0x230   :  { %v949_v54 = vsub.f32 0.0, %v925_v41  ;;  %2176 = vpow2.f32 %v987_v45  ;;  %v1230_v61 = vadd.f32 %v1094_v58, %v846_v62  ;;  %v950_v13 = vsub.f32 0.0, %v926_v56 }
 0x231   :  { %v1253_v49 = vsel %vm869_vm4, %v2572_v12, %v1229_v48  ;;  %v1110_v14 = vand.u32 2147483647, %v2697_v63  ;;  %2178 = vlog2.f32 %v1113_v57  ;;  %v849_v16 = vmax.f32 %v2645_v17, 0.0 }
 0x232   :  { %v1998_v38 = vpop.f32.mrb[18].mxu1  ;;  %2025 = vmatprep.mubr.msk.f32.mxu1 %vm43_vm0, %v1253_v49  ;;  %v989_v8 = vmul.f32 1.442695, %v949_v54  ;;  %v1254_v62 = vsel %vm870_vm2, %v2564_v6, %v1230_v61  ;;  %v1108_v20 = vadd.f32 1.0, %v1107_v0  ;;  %v1116_v21 = vmul.f32 -0.5, %v2721_v53 }
 0x233   :  { %v2729_v59 = vadd.f32 %v1998_v38, %v2516_v5  ;;  %v808_v60 = vpop.f32.mrb[19].mxu1  ;;  %v2169_v1 = vpop.eup %2168  ;;  %2026 = vmatmul.mubr.msk.f32.gmra.mrb[32].mxu1 %vm43_vm0, %v1254_v62  ;;  %v851_v6 = vmax.f32 %v2674_v29, 0.0  ;;  %vm871_vm7 = vcmp.ne.f32.partialorder %v2608_v52, %v2608_v52  ;;  %vm872_vm8 = vcmp.ne.f32.partialorder %v2602_v9, %v2602_v9 }
 0x234   :  { %v2736_v2 = vadd.f32 %v2516_v5, %v808_v60  ;;  %v2744_v4 = vpop.eup %2170  ;;  %v1097_v11 = vmul.f32 0.6931472, %v2169_v1  ;;  %2180 = vpow2.f32 %v989_v8  ;;  %v991_v30 = vmul.f32 1.442695, %v950_v13 }
 0x235   :  { %v928_v10 = vand.u32 2147483647, %v2729_v59  ;;  %v1122_v26 = vadd.f32 1.0, %v2744_v4  ;;  %vm2767_vm9 = vcmp.lt.f32.partialorder %v1110_v14, 0.0004427343  ;;  %v1109_v15 = vmul.f32 %v2697_v63, %v1108_v20 }
 0x236   :  { %v927_v27 = vand.u32 2147483647, %v2736_v2  ;;  %v1103_v19 = vsel %vm2739_vm6, %v1100_v3, %v1097_v11  ;;  %v2758_v22 = vpop.eup %2172  ;;  %v1117_v39 = vadd.f32 1.0, %v1116_v21  ;;  %v1125_v47 = vmul.f32 -0.5, %v2744_v4 }
 0x237   :  { %v1231_v24 = vadd.f32 %v1103_v19, %v847_v33  ;;  %v952_v28 = vsub.f32 0.0, %v928_v10  ;;  %2182 = vlog2.f32 %v1122_v26  ;;  %v1131_v41 = vadd.f32 1.0, %v2758_v22 }
 0x238   :  { %v951_v23 = vsub.f32 0.0, %v927_v27  ;;  %v1119_v32 = vand.u32 2147483647, %v2721_v53  ;;  %v1134_v51 = vmul.f32 -0.5, %v2758_v22  ;;  %vm873_vm10 = vcmp.ne.f32.partialorder %v2645_v17, %v2645_v17 }
 0x239   :  { %v1255_v25 = vsel %vm871_vm7, %v2608_v52, %v1231_v24  ;;  %v2175_v33 = vpop.eup %2174  ;;  %v995_v42 = vmul.f32 1.442695, %v952_v28  ;;  %2184 = vlog2.f32 %v1131_v41  ;;  %v1118_v38 = vmul.f32 %v2721_v53, %v1117_v39 }
 0x23a   :  { %v2001_v31 = vpop.f32.mrb[20].mxu1  ;;  %2028 = vmatprep.mubr.msk.f32.mxu1 %vm43_vm0, %v1255_v25  ;;  %v993_v43 = vmul.f32 1.442695, %v951_v23  ;;  %v1106_v45 = vmul.f32 0.6931472, %v2175_v33  ;;  %v2781_v46 = vpop.eup %2176  ;;  %2186 = vpow2.f32 %v991_v30  ;;  %v1126_v60 = vadd.f32 1.0, %v1125_v47 }
 0x23b   :  { %v2772_v36 = vadd.f32 %v2001_v31, %v2516_v5  ;;  %v818_v37 = vpop.f32.mrb[21].mxu1  ;;  %v2179_v49 = vpop.eup %2178  ;;  %v1140_v61 = vadd.f32 1.0, %v2781_v46  ;;  %vm1120_vm11 = vcmp.lt.f32.partialorder %v1119_v32, 0.0004427343  ;;  %v1128_v53 = vand.u32 2147483647, %v2744_v4 }
 0x23c   :  { %v2778_v52 = vadd.f32 %v2516_v5, %v818_v37  ;;  %v1112_v50 = vsel %vm2767_vm9, %v1109_v15, %v1106_v45  ;;  %2188 = vpow2.f32 %v993_v43  ;;  %v1115_v1 = vmul.f32 0.6931472, %v2179_v49 }
 0x23d   :  { %v930_v48 = vand.u32 2147483647, %v2772_v36  ;;  %v1232_v56 = vadd.f32 %v1112_v50, %v848_v44  ;;  %2190 = vpow2.f32 %v995_v42  ;;  %v1135_v12 = vadd.f32 1.0, %v1134_v51 }
 0x23e   :  { %v929_v63 = vand.u32 2147483647, %v2778_v52  ;;  %2192 = vlog2.f32 %v1140_v61  ;;  %v2801_v57 = vpop.eup %2180  ;;  %v1121_v62 = vsel %vm1120_vm11, %v1118_v38, %v1115_v1  ;;  %vm874_vm12 = vcmp.ne.f32.partialorder %v2638_v18, %v2638_v18 }
 0x23f   :  { %v954_v54 = vsub.f32 0.0, %v930_v48  ;;  %v1256_v0 = vsel %vm872_vm8, %v2602_v9, %v1232_v56  ;;  %v1233_v13 = vadd.f32 %v1121_v62, %v849_v16  ;;  %v1127_v14 = vmul.f32 %v2744_v4, %v1126_v60 }
 0x240   :  { %v953_v58 = vsub.f32 0.0, %v929_v63  ;;  %2029 = vmatmul.mubr.msk.f32.gmra.mrb[34].mxu1 %vm43_vm0, %v1256_v0  ;;  %v1143_v19 = vmul.f32 -0.5, %v2781_v46  ;;  %v1137_v23 = vand.u32 2147483647, %v2758_v22  ;;  %vm1129_vm13 = vcmp.lt.f32.partialorder %v1128_v53, 0.0004427343 }
 0x241   :  { %v999_v8 = vmul.f32 1.442695, %v954_v54  ;;  %v2183_v9 = vpop.eup %2182  ;;  %v1257_v24 = vsel %vm873_vm10, %v2645_v17, %v1233_v13  ;;  %v1149_v30 = vadd.f32 1.0, %v2801_v57  ;;  %v1152_v45 = vmul.f32 -0.5, %v2801_v57 }
 0x242   :  { %v997_v44 = vmul.f32 1.442695, %v953_v58  ;;  %v2004_v3 = vpop.f32.mrb[22].mxu1  ;;  %v1124_v21 = vmul.f32 0.6931472, %v2183_v9  ;;  %2031 = vmatprep.mubr.msk.f32.mxu1 %vm43_vm0, %v1257_v24  ;;  %v1144_v33 = vadd.f32 1.0, %v1143_v19  ;;  %vm875_vm15 = vcmp.ne.f32.partialorder %v2674_v29, %v2674_v29 }
 0x243   :  { %v2804_v10 = vadd.f32 %v2004_v3, %v2516_v5  ;;  %v828_v11 = vpop.f32.mrb[23].mxu1  ;;  %v2185_v26 = vpop.eup %2184  ;;  %vm1138_vm14 = vcmp.lt.f32.partialorder %v1137_v23, 0.0004427343  ;;  %v852_v51 = vmax.f32 %v2665_v7, 0.0  ;;  %v853_v60 = vmax.f32 %v2702_v34, 0.0 }
 0x244   :  { %v2811_v27 = vadd.f32 %v2516_v5, %v828_v11  ;;  %2194 = vpow2.f32 %v997_v44  ;;  %v1136_v5 = vmul.f32 %v2758_v22, %v1135_v12  ;;  %v1130_v28 = vsel %vm1129_vm13, %v1127_v14, %v1124_v21  ;;  %v2825_v31 = vpop.eup %2186 }
 0x245   :  { %v932_v20 = vand.u32 2147483647, %v2804_v10  ;;  %2196 = vpow2.f32 %v999_v8  ;;  %v1234_v35 = vadd.f32 %v1130_v28, %v850_v55  ;;  %v1133_v17 = vmul.f32 0.6931472, %v2185_v26 }
 0x246   :  { %v931_v16 = vand.u32 2147483647, %v2811_v27  ;;  %v1146_v22 = vand.u32 2147483647, %v2781_v46  ;;  %2198 = vlog2.f32 %v1149_v30  ;;  %v2830_v15 = vpop.eup %2188  ;;  %v1158_v42 = vadd.f32 1.0, %v2825_v31 }
 0x247   :  { %v956_v4 = vsub.f32 0.0, %v932_v20  ;;  %v1258_v41 = vsel %vm874_vm12, %v2638_v18, %v1234_v35  ;;  %v1139_v43 = vsel %vm1138_vm14, %v1136_v5, %v1133_v17  ;;  %v2837_v47 = vpop.eup %2190  ;;  %v1145_v18 = vmul.f32 %v2781_v46, %v1144_v33 }
 0x248   :  { %v955_v25 = vsub.f32 0.0, %v931_v16  ;;  %2032 = vmatmul.mubr.msk.f32.gmra.mrb[36].mxu1 %vm43_vm0, %v1258_v41  ;;  %v1235_v55 = vadd.f32 %v1139_v43, %v851_v6  ;;  %v2193_v48 = vpop.eup %2192  ;;  %v1167_v50 = vadd.f32 1.0, %v2830_v15  ;;  %vm1147_vm1 = vcmp.lt.f32.partialorder %v1146_v22, 0.0004427343 }
 0x249   :  { %v1003_v37 = vmul.f32 1.442695, %v956_v4  ;;  %v1142_v63 = vmul.f32 0.6931472, %v2193_v48  ;;  %v1153_v6 = vadd.f32 1.0, %v1152_v45  ;;  %v1161_v38 = vmul.f32 -0.5, %v2825_v31 }
 0x24a   :  { %v1001_v39 = vmul.f32 1.442695, %v955_v25  ;;  %v1259_v32 = vsel %vm875_vm15, %v2674_v29, %v1235_v55  ;;  %v1176_v46 = vadd.f32 1.0, %v2837_v47  ;;  %v854_v29 = vmax.f32 %v2714_v40, 0.0 }
 0x24b   :  { %2200 = vpow2.f32 %v1003_v37  ;;  %2034 = vmatprep.mubr.msk.f32.mxu1 %vm43_vm0, %v1259_v32  ;;  %v1148_v56 = vsel %vm1147_vm1, %v1145_v18, %v1142_v63  ;;  %vm876_vm2 = vcmp.ne.f32.partialorder %v2665_v7, %v2665_v7  ;;  %v1155_v61 = vand.u32 2147483647, %v2801_v57 }
 0x24c   :  { %2202 = vpow2.f32 %v1001_v39  ;;  %v1236_v49 = vadd.f32 %v1148_v56, %v852_v51  ;;  %v856_v0 = vmax.f32 %v2729_v59, 0.0  ;;  %v1170_v44 = vmul.f32 -0.5, %v2830_v15 }
 0x24d   :  { %2204 = vlog2.f32 %v1158_v42  ;;  %v855_v12 = vmax.f32 %v2736_v2, 0.0  ;;  %v1154_v8 = vmul.f32 %v2801_v57, %v1153_v6  ;;  %v1162_v62 = vadd.f32 1.0, %v1161_v38 }
 0x24e   :  { %v2850_v54 = vpop.eup %2194  ;;  %2206 = vlog2.f32 %v1167_v50  ;;  %v1260_v1 = vsel %vm876_vm2, %v2665_v7, %v1236_v49  ;;  %v1164_v11 = vand.u32 2147483647, %v2825_v31  ;;  %v1179_v13 = vmul.f32 -0.5, %v2837_v47 }
 0x24f   :  { %v2855_v58 = vpop.eup %2196  ;;  %2208 = vlog2.f32 %v1176_v46  ;;  %v1185_v3 = vadd.f32 1.0, %v2850_v54  ;;  %2035 = vmatmul.mubr.msk.f32.gmra.mrb[38].mxu1 %vm43_vm0, %v1260_v1  ;;  %v857_v19 = vmax.f32 %v2778_v52, 0.0  ;;  %vm877_vm3 = vcmp.ne.f32.partialorder %v2702_v34, %v2702_v34 }
 0x250   :  { %v2199_v53 = vpop.eup %2198  ;;  %v1194_v7 = vadd.f32 1.0, %v2855_v58  ;;  %vm1156_vm4 = vcmp.lt.f32.partialorder %v1155_v61, 0.0004427343  ;;  %vm878_vm5 = vcmp.ne.f32.partialorder %v2714_v40, %v2714_v40  ;;  %v1171_v21 = vadd.f32 1.0, %v1170_v44 }
 0x251   :  { %v1151_v9 = vmul.f32 0.6931472, %v2199_v53  ;;  %2210 = vlog2.f32 %v1185_v3  ;;  %v1173_v23 = vand.u32 2147483647, %v2830_v15  ;;  %vm2881_vm6 = vcmp.lt.f32.partialorder %v1164_v11, 0.0004427343 }
 0x252   :  { %2212 = vlog2.f32 %v1194_v7  ;;  %v1188_v26 = vmul.f32 -0.5, %v2850_v54  ;;  %v1163_v30 = vmul.f32 %v2825_v31, %v1162_v62  ;;  %v1180_v25 = vadd.f32 1.0, %v1179_v13 }
 0x253   :  { %v1157_v20 = vsel %vm1156_vm4, %v1154_v8, %v1151_v9  ;;  %v1182_v35 = vand.u32 2147483647, %v2837_v47  ;;  %v1197_v37 = vmul.f32 -0.5, %v2855_v58  ;;  %v1172_v41 = vmul.f32 %v2830_v15, %v1171_v21 }
 0x254   :  { %v1237_v16 = vadd.f32 %v1157_v20, %v853_v60  ;;  %vm1174_vm7 = vcmp.lt.f32.partialorder %v1173_v23, 0.0004427343  ;;  %v1189_v55 = vadd.f32 1.0, %v1188_v26  ;;  %v1191_v42 = vand.u32 2147483647, %v2850_v54 }
 0x255   :  { %v2871_v14 = vpop.eup %2200  ;;  %v1181_v18 = vmul.f32 %v2837_v47, %v1180_v25  ;;  %vm1183_vm8 = vcmp.lt.f32.partialorder %v1182_v35, 0.0004427343  ;;  %v1198_v15 = vadd.f32 1.0, %v1197_v37  ;;  %vm879_vm9 = vcmp.ne.f32.partialorder %v2736_v2, %v2736_v2 }
 0x256   :  { %v2878_v57 = vpop.eup %2202  ;;  %v1261_v33 = vsel %vm877_vm3, %v2702_v34, %v1237_v16  ;;  %v1212_v22 = vadd.f32 1.0, %v2871_v14  ;;  %v1200_v56 = vand.u32 2147483647, %v2855_v58  ;;  %v1215_v47 = vmul.f32 -0.5, %v2871_v14 }
 0x257   :  { %v2205_v24 = vpop.eup %2204  ;;  %v1203_v4 = vadd.f32 1.0, %v2878_v57  ;;  %2037 = vmatprep.mubr.msk.f32.mxu1 %vm43_vm0, %v1261_v33  ;;  %v1206_v32 = vmul.f32 -0.5, %v2878_v57  ;;  %vm880_vm10 = vcmp.ne.f32.partialorder %v2729_v59, %v2729_v59  ;;  %vm1192_vm11 = vcmp.lt.f32.partialorder %v1191_v42, 0.0004427343 }
 0x258   :  { %v1160_v28 = vmul.f32 0.6931472, %v2205_v24  ;;  %v2207_v17 = vpop.eup %2206  ;;  %v1209_v61 = vand.u32 2147483647, %v2878_v57  ;;  %v1199_v3 = vmul.f32 %v2855_v58, %v1198_v15  ;;  %vm1201_vm12 = vcmp.lt.f32.partialorder %v1200_v56, 0.0004427343 }
 0x259   :  { %2214 = vlog2.f32 %v1203_v4  ;;  %v1169_v31 = vmul.f32 0.6931472, %v2207_v17  ;;  %v2209_v43 = vpop.eup %2208  ;;  %v1207_v60 = vadd.f32 1.0, %v1206_v32  ;;  %v1216_v53 = vadd.f32 1.0, %v1215_v47 }
 0x25a   :  { %v1166_v39 = vsel %vm2881_vm6, %v1163_v30, %v1160_v28  ;;  %2216 = vlog2.f32 %v1212_v22  ;;  %v1178_v48 = vmul.f32 0.6931472, %v2209_v43  ;;  %vm881_vm13 = vcmp.ne.f32.partialorder %v2778_v52, %v2778_v52 }
 0x25b   :  { %v1238_v45 = vadd.f32 %v1166_v39, %v854_v29  ;;  %v1175_v34 = vsel %vm1174_vm7, %v1172_v41, %v1169_v31  ;;  %v2211_v51 = vpop.eup %2210  ;;  %v1190_v29 = vmul.f32 %v2850_v54, %v1189_v55  ;;  %v1208_v9 = vmul.f32 %v2878_v57, %v1207_v60 }
 0x25c   :  { %v1239_v50 = vadd.f32 %v1175_v34, %v855_v12  ;;  %v1184_v6 = vsel %vm1183_vm8, %v1181_v18, %v1178_v48  ;;  %v2213_v49 = vpop.eup %2212  ;;  %v859_v7 = vmax.f32 %v2811_v27, 0.0  ;;  %vm882_vm14 = vcmp.ne.f32.partialorder %v2772_v36, %v2772_v36 }
 0x25d   :  { %v1262_v63 = vsel %vm878_vm5, %v2714_v40, %v1238_v45  ;;  %v1240_v46 = vadd.f32 %v1184_v6, %v856_v0  ;;  %v1187_v40 = vmul.f32 0.6931472, %v2211_v51  ;;  %v858_v0 = vmax.f32 %v2772_v36, 0.0 }
 0x25e   :  { %2038 = vmatmul.mubr.msk.f32.gmra.mrb[40].mxu1 %vm43_vm0, %v1262_v63  ;;  %v1263_v38 = vsel %vm879_vm9, %v2736_v2, %v1239_v50  ;;  %v1196_v2 = vmul.f32 0.6931472, %v2213_v49  ;;  %vm1210_vm15 = vcmp.lt.f32.partialorder %v1209_v61, 0.0004427343  ;;  %v1217_v23 = vmul.f32 %v2871_v14, %v1216_v53 }
 0x25f   :  { %2040 = vmatprep.mubr.msk.f32.mxu1 %vm43_vm0, %v1263_v38  ;;  %v1264_v1 = vsel %vm880_vm10, %v2729_v59, %v1240_v46  ;;  %v1193_v44 = vsel %vm1192_vm11, %v1190_v29, %v1187_v40  ;;  %v1218_v59 = vand.u32 2147483647, %v2871_v14  ;;  %vm883_vm2 = vcmp.ne.f32.partialorder %v2811_v27, %v2811_v27  ;;  %v2949_v14 = vld [vmem:[%s3047_s5] ss:$0 sm:$0xff]  ;;  %s2318_s5 = smov [#allocation6]  }
 0x260   :  { %v1241_v54 = vadd.f32 %v1193_v44, %v857_v19  ;;  %v1202_v8 = vsel %vm1201_vm12, %v1199_v3, %v1196_v2  ;;  %vm884_vm3 = vcmp.ne.f32.partialorder %v2804_v10, %v2804_v10  ;;  %v1537_v25 = vlaneseq  ;;  %s1691_s13 = sshll.u32 %s2318_s5, 4  ;;  %s1692_s13 = int_to_ptr.vmem [resolvable:$true] %s1691_s13 }
 0x261   :  { %v1242_v11 = vadd.f32 %v1202_v8, %v858_v0  ;;  %vm1219_vm1 = vcmp.lt.f32.partialorder %v1218_v59, 0.0004427343  ;;  %s2288_s14 = scalar_lea.vmem %s1692_s13, 3072  ;;  %p2293_p9 = scmp.lt.s32.totalorder %s1692_s13, %s1692_s13 }
 0x262   :  { %2041 = vmatmul.mubr.msk.f32.gmra.mrb[42].mxu1 %vm43_vm0, %v1264_v1  ;;  %v1265_v62 = vsel %vm881_vm13, %v2778_v52, %v1241_v54  ;;  %v860_v52 = vmax.f32 %v2804_v10, 0.0  ;;  %p2289_p8 = scmp.ne.s32.totalorder %s1692_s13, %s2288_s14  ;;  %p2294_p10 = scmp.lt.s32.totalorder %s2288_s14, %s2288_s14 }
 0x263   :  { %v2215_v12 = vpop.eup %2214  ;;  %2043 = vmatprep.mubr.msk.f32.mxu1 %vm43_vm0, %v1265_v62  ;;  %v1266_v19 = vsel %vm882_vm14, %v2772_v36, %v1242_v11 }
 0x264   :  { %v1205_v58 = vmul.f32 0.6931472, %v2215_v12  ;;  %v2217_v13 = vpop.eup %2216  ;;  %p2295_p11 = por %p2294_p10, %p2293_p9 }
 0x265   :  { %v1214_v21 = vmul.f32 0.6931472, %v2217_v13 }
 0x266   :  { %v1211_v20 = vsel %vm1210_vm15, %v1208_v9, %v1205_v58  ;;  %2044 = vmatmul.mubr.msk.f32.gmra.mrb[44].mxu1 %vm43_vm0, %v1266_v19  ;;  %p2296_p12 = pnand %p2295_p11, %p2289_p8 }
 0x267   :  { %v1243_v57 = vadd.f32 %v1211_v20, %v859_v7  ;;  %v1220_v24 = vsel %vm1219_vm1, %v1217_v23, %v1214_v21 }
 0x268   :  { %v1244_v5 = vadd.f32 %v1220_v24, %v860_v52 }
 0x269   :  { %v1267_v16 = vsel %vm883_vm2, %v2811_v27, %v1243_v57 }
 0x26a   :  { %2046 = vmatprep.mubr.msk.f32.mxu1 %vm43_vm0, %v1267_v16  ;;  %v1268_v36 = vsel %vm884_vm3, %v2804_v10, %v1244_v5  ;;  %v1538_v10 = vand.u32 127, %v1537_v25 }
 0x26b   :  { %2047 = vmatmul.mubr.msk.f32.gmra.mrb[46].mxu1 %vm43_vm0, %v1268_v36 }
 0x26c   :  { %vm1539_vm0 = vcmp.ge.s32.totalorder %v1538_v10, 8  ;;  %vm1540_vm4 = vcmp.lt.s32.totalorder %v1538_v10, 16 }
 0x26d   :  { %vm2955_vm5 = vmand %vm1539_vm0, %vm1540_vm4 }
 0x2e6   :  { %v2015_v26 = vpop.f32.mrb[24].mxu1 }
 0x2e7   :  { %v1424_v4 = vadd.f32 %v2015_v26, %v2949_v14  ;;  %v1418_v28 = vpop.f32.mrb[25].mxu1 }
 0x2e8   :  { %v1419_v27 = vadd.f32 %v2949_v14, %v1418_v28 }
 0x2e9   :  { %v1794_v30 = vclamps-f32 %v1424_v4, 5.0 }
 0x2ea   :  { %v1793_v35 = vclamps-f32 %v1419_v27, 5.0 }
 0x2eb   :  { %v1592_v17 = vmul.f32 1.442695, %v1794_v30 }
 0x2ec   :  { %v1590_v33 = vmul.f32 1.442695, %v1793_v35 }
 0x2ed   :  { %2218 = vpow2.f32 %v1592_v17 }
 0x2ee   :  { %2220 = vpow2.f32 %v1590_v33  ;;  %v2018_v37 = vpop.f32.mrb[26].mxu1 }
 0x2ef   :  { %v1434_v22 = vadd.f32 %v2018_v37, %v2949_v14  ;;  %v1428_v39 = vpop.f32.mrb[27].mxu1 }
 0x2f0   :  { %v1429_v31 = vadd.f32 %v2949_v14, %v1428_v39 }
 0x2f1   :  { %v1796_v41 = vclamps-f32 %v1434_v22, 5.0 }
 0x2f2   :  { %v1795_v43 = vclamps-f32 %v1429_v31, 5.0 }
 0x2f3   :  { %v1596_v45 = vmul.f32 1.442695, %v1796_v41 }
 0x2f4   :  { %v1594_v55 = vmul.f32 1.442695, %v1795_v43 }
 0x2f5   :  { %2222 = vpow2.f32 %v1596_v45 }
 0x2f6   :  { %2224 = vpow2.f32 %v1594_v55  ;;  %v2021_v48 = vpop.f32.mrb[28].mxu1 }
 0x2f7   :  { %v2219_v34 = vpop.eup %2218  ;;  %v1444_v63 = vadd.f32 %v2021_v48, %v2949_v14  ;;  %v1438_v50 = vpop.f32.mrb[29].mxu1 }
 0x2f8   :  { %v2221_v18 = vpop.eup %2220  ;;  %v1639_v32 = vsel %vm2955_vm5, %v2219_v34, %v1424_v4  ;;  %v1439_v51 = vadd.f32 %v2949_v14, %v1438_v50 }
 0x2f9   :  { %1663 = vst [vmem:[#allocation6 + $0x8] sm:$0xff] %v1639_v32  ;;  %v1638_v15 = vsel %vm2955_vm5, %v2221_v18, %v1419_v27  ;;  %v1798_v6 = vclamps-f32 %v1444_v63, 5.0 }
 0x2fa   :  { %1662 = vst [vmem:[#allocation6] sm:$0xff] %v1638_v15  ;;  %v1797_v56 = vclamps-f32 %v1439_v51, 5.0 }
 0x2fb   :  { %v1600_v47 = vmul.f32 1.442695, %v1798_v6 }
 0x2fc   :  { %v1598_v38 = vmul.f32 1.442695, %v1797_v56 }
 0x2fd   :  { %2226 = vpow2.f32 %v1600_v47 }
 0x2fe   :  { %2228 = vpow2.f32 %v1598_v38 }
 0x2ff   :  { %v2223_v46 = vpop.eup %2222 }
 0x300   :  { %v2225_v40 = vpop.eup %2224  ;;  %v1641_v29 = vsel %vm2955_vm5, %v2223_v46, %v1434_v22 }
 0x301   :  { %1665 = vst [vmem:[#allocation6 + $0x18] sm:$0xff] %v1641_v29  ;;  %v1640_v49 = vsel %vm2955_vm5, %v2225_v40, %v1429_v31  ;;  %v2024_v60 = vpop.f32.mrb[30].mxu1 }
 0x302   :  { %1664 = vst [vmem:[#allocation6 + $0x10] sm:$0xff] %v1640_v49  ;;  %v1454_v61 = vadd.f32 %v2024_v60, %v2949_v14  ;;  %v1448_v1 = vpop.f32.mrb[31].mxu1 }
 0x303   :  { %v1449_v44 = vadd.f32 %v2949_v14, %v1448_v1 }
 0x304   :  { %v1800_v2 = vclamps-f32 %v1454_v61, 5.0 }
 0x305   :  { %v1799_v3 = vclamps-f32 %v1449_v44, 5.0 }
 0x306   :  { %v1604_v0 = vmul.f32 1.442695, %v1800_v2  ;;  %v2027_v59 = vpop.f32.mrb[32].mxu1 }
 0x307   :  { %v1602_v54 = vmul.f32 1.442695, %v1799_v3  ;;  %v2227_v53 = vpop.eup %2226  ;;  %v1464_v11 = vadd.f32 %v2027_v59, %v2949_v14  ;;  %v1458_v58 = vpop.f32.mrb[33].mxu1 }
 0x308   :  { %2230 = vpow2.f32 %v1604_v0  ;;  %v2229_v12 = vpop.eup %2228  ;;  %v1643_v8 = vsel %vm2955_vm5, %v2227_v53, %v1444_v63  ;;  %v1459_v9 = vadd.f32 %v2949_v14, %v1458_v58 }
 0x309   :  { %2232 = vpow2.f32 %v1602_v54  ;;  %1667 = vst [vmem:[#allocation6 + $0x28] sm:$0xff] %v1643_v8  ;;  %v1642_v62 = vsel %vm2955_vm5, %v2229_v12, %v1439_v51  ;;  %v1802_v13 = vclamps-f32 %v1464_v11, 5.0 }
 0x30a   :  { %1666 = vst [vmem:[#allocation6 + $0x20] sm:$0xff] %v1642_v62  ;;  %v1801_v7 = vclamps-f32 %v1459_v9, 5.0 }
 0x30b   :  { %v1608_v19 = vmul.f32 1.442695, %v1802_v13 }
 0x30c   :  { %v1606_v20 = vmul.f32 1.442695, %v1801_v7 }
 0x30d   :  { %2234 = vpow2.f32 %v1608_v19 }
 0x30e   :  { %2236 = vpow2.f32 %v1606_v20 }
 0x312   :  { %v2231_v21 = vpop.eup %2230 }
 0x313   :  { %v2233_v23 = vpop.eup %2232  ;;  %v1645_v52 = vsel %vm2955_vm5, %v2231_v21, %v1454_v61  ;;  %v2030_v24 = vpop.f32.mrb[34].mxu1 }
 0x314   :  { %1669 = vst [vmem:[#allocation6 + $0x38] sm:$0xff] %v1645_v52  ;;  %v1644_v57 = vsel %vm2955_vm5, %v2233_v23, %v1449_v44  ;;  %v1474_v16 = vadd.f32 %v2030_v24, %v2949_v14  ;;  %v1468_v5 = vpop.f32.mrb[35].mxu1 }
 0x315   :  { %1668 = vst [vmem:[#allocation6 + $0x30] sm:$0xff] %v1644_v57  ;;  %v1469_v36 = vadd.f32 %v2949_v14, %v1468_v5 }
 0x316   :  { %v1804_v26 = vclamps-f32 %v1474_v16, 5.0 }
 0x317   :  { %v1803_v4 = vclamps-f32 %v1469_v36, 5.0  ;;  %v2235_v28 = vpop.eup %2234 }
 0x318   :  { %v1612_v27 = vmul.f32 1.442695, %v1804_v26  ;;  %v2237_v30 = vpop.eup %2236  ;;  %v1647_v25 = vsel %vm2955_vm5, %v2235_v28, %v1464_v11 }
 0x319   :  { %v1610_v35 = vmul.f32 1.442695, %v1803_v4  ;;  %1671 = vst [vmem:[#allocation6 + $0x48] sm:$0xff] %v1647_v25  ;;  %v1646_v17 = vsel %vm2955_vm5, %v2237_v30, %v1459_v9 }
 0x31a   :  { %2238 = vpow2.f32 %v1612_v27  ;;  %1670 = vst [vmem:[#allocation6 + $0x40] sm:$0xff] %v1646_v17 }
 0x31b   :  { %2240 = vpow2.f32 %v1610_v35  ;;  %v2033_v33 = vpop.f32.mrb[36].mxu1 }
 0x31c   :  { %v1484_v10 = vadd.f32 %v2033_v33, %v2949_v14  ;;  %v1478_v37 = vpop.f32.mrb[37].mxu1 }
 0x31d   :  { %v1479_v22 = vadd.f32 %v2949_v14, %v1478_v37 }
 0x31e   :  { %v1806_v39 = vclamps-f32 %v1484_v10, 5.0 }
 0x31f   :  { %v1805_v31 = vclamps-f32 %v1479_v22, 5.0 }
 0x320   :  { %v1616_v41 = vmul.f32 1.442695, %v1806_v39 }
 0x321   :  { %v1614_v43 = vmul.f32 1.442695, %v1805_v31 }
 0x322   :  { %2242 = vpow2.f32 %v1616_v41  ;;  %v2036_v55 = vpop.f32.mrb[38].mxu1 }
 0x323   :  { %2244 = vpow2.f32 %v1614_v43  ;;  %v1494_v18 = vadd.f32 %v2036_v55, %v2949_v14  ;;  %v1488_v32 = vpop.f32.mrb[39].mxu1 }
 0x324   :  { %v2239_v45 = vpop.eup %2238  ;;  %v1489_v50 = vadd.f32 %v2949_v14, %v1488_v32 }
 0x325   :  { %v2241_v34 = vpop.eup %2240  ;;  %v1649_v48 = vsel %vm2955_vm5, %v2239_v45, %v1474_v16  ;;  %v1808_v15 = vclamps-f32 %v1494_v18, 5.0 }
 0x326   :  { %1673 = vst [vmem:[#allocation6 + $0x58] sm:$0xff] %v1649_v48  ;;  %v1648_v63 = vsel %vm2955_vm5, %v2241_v34, %v1469_v36  ;;  %v1807_v51 = vclamps-f32 %v1489_v50, 5.0 }
 0x327   :  { %1672 = vst [vmem:[#allocation6 + $0x50] sm:$0xff] %v1648_v63  ;;  %v1620_v6 = vmul.f32 1.442695, %v1808_v15 }
 0x328   :  { %v1618_v56 = vmul.f32 1.442695, %v1807_v51 }
 0x329   :  { %2246 = vpow2.f32 %v1620_v6 }
 0x32a   :  { %2248 = vpow2.f32 %v1618_v56 }
 0x32c   :  { %v2243_v47 = vpop.eup %2242 }
 0x32d   :  { %v2245_v38 = vpop.eup %2244  ;;  %v1651_v46 = vsel %vm2955_vm5, %v2243_v47, %v1484_v10 }
 0x32e   :  { %1675 = vst [vmem:[#allocation6 + $0x68] sm:$0xff] %v1651_v46  ;;  %v1650_v40 = vsel %vm2955_vm5, %v2245_v38, %v1479_v22 }
 0x32f   :  { %1674 = vst [vmem:[#allocation6 + $0x60] sm:$0xff] %v1650_v40 }
 0x331   :  { %v2039_v29 = vpop.f32.mrb[40].mxu1 }
 0x332   :  { %v1504_v49 = vadd.f32 %v2039_v29, %v2949_v14  ;;  %v1498_v60 = vpop.f32.mrb[41].mxu1 }
 0x333   :  { %v1499_v61 = vadd.f32 %v2949_v14, %v1498_v60  ;;  %v2247_v53 = vpop.eup %2246 }
 0x334   :  { %v1810_v1 = vclamps-f32 %v1504_v49, 5.0  ;;  %v2249_v59 = vpop.eup %2248  ;;  %v1653_v62 = vsel %vm2955_vm5, %v2247_v53, %v1494_v18 }
 0x335   :  { %v1809_v44 = vclamps-f32 %v1499_v61, 5.0  ;;  %v2042_v2 = vpop.f32.mrb[42].mxu1  ;;  %1677 = vst [vmem:[#allocation6 + $0x78] sm:$0xff] %v1653_v62  ;;  %v1652_v58 = vsel %vm2955_vm5, %v2249_v59, %v1489_v50 }
 0x336   :  { %v1624_v3 = vmul.f32 1.442695, %v1810_v1  ;;  %v1514_v0 = vadd.f32 %v2042_v2, %v2949_v14  ;;  %v1508_v54 = vpop.f32.mrb[43].mxu1  ;;  %1676 = vst [vmem:[#allocation6 + $0x70] sm:$0xff] %v1652_v58 }
 0x337   :  { %v1622_v12 = vmul.f32 1.442695, %v1809_v44  ;;  %v1509_v8 = vadd.f32 %v2949_v14, %v1508_v54 }
 0x338   :  { %2250 = vpow2.f32 %v1624_v3  ;;  %v1812_v11 = vclamps-f32 %v1514_v0, 5.0 }
 0x339   :  { %2252 = vpow2.f32 %v1622_v12  ;;  %v1811_v9 = vclamps-f32 %v1509_v8, 5.0  ;;  %v2045_v7 = vpop.f32.mrb[44].mxu1 }
 0x33a   :  { %v1628_v13 = vmul.f32 1.442695, %v1812_v11  ;;  %v1524_v20 = vadd.f32 %v2045_v7, %v2949_v14  ;;  %v1518_v21 = vpop.f32.mrb[45].mxu1 }
 0x33b   :  { %v1626_v19 = vmul.f32 1.442695, %v1811_v9  ;;  %v1519_v23 = vadd.f32 %v2949_v14, %v1518_v21 }
 0x33c   :  { %2254 = vpow2.f32 %v1628_v13  ;;  %v1814_v52 = vclamps-f32 %v1524_v20, 5.0 }
 0x33d   :  { %2256 = vpow2.f32 %v1626_v19  ;;  %v1813_v57 = vclamps-f32 %v1519_v23, 5.0 }
 0x33e   :  { %v1632_v24 = vmul.f32 1.442695, %v1814_v52  ;;  %v2048_v16 = vpop.f32.mrb[46].mxu1 }
 0x33f   :  { %v1630_v5 = vmul.f32 1.442695, %v1813_v57  ;;  %v1534_v36 = vadd.f32 %v2048_v16, %v2949_v14  ;;  %v1528_v26 = vpop.f32.mrb[47].mxu1 }
 0x340   :  { %2258 = vpow2.f32 %v1632_v24  ;;  %v1529_v4 = vadd.f32 %v2949_v14, %v1528_v26 }
 0x341   :  { %2260 = vpow2.f32 %v1630_v5  ;;  %v1816_v27 = vclamps-f32 %v1534_v36, 5.0 }
 0x342   :  { %v2251_v28 = vpop.eup %2250  ;;  %v1815_v35 = vclamps-f32 %v1529_v4, 5.0 }
 0x343   :  { %v2253_v30 = vpop.eup %2252  ;;  %v1655_v25 = vsel %vm2955_vm5, %v2251_v28, %v1504_v49  ;;  %v1636_v33 = vmul.f32 1.442695, %v1816_v27 }
 0x344   :  { %1679 = vst [vmem:[#allocation6 + $0x88] sm:$0xff] %v1655_v25  ;;  %v1654_v17 = vsel %vm2955_vm5, %v2253_v30, %v1499_v61  ;;  %v1634_v10 = vmul.f32 1.442695, %v1815_v35 }
 0x345   :  { %1678 = vst [vmem:[#allocation6 + $0x80] sm:$0xff] %v1654_v17  ;;  %2262 = vpow2.f32 %v1636_v33 }
 0x346   :  { %v2255_v37 = vpop.eup %2254  ;;  %2264 = vpow2.f32 %v1634_v10 }
 0x347   :  { %v2257_v22 = vpop.eup %2256  ;;  %v1657_v14 = vsel %vm2955_vm5, %v2255_v37, %v1514_v0 }
 0x348   :  { %1681 = vst [vmem:[#allocation6 + $0x98] sm:$0xff] %v1657_v14  ;;  %v1656_v39 = vsel %vm2955_vm5, %v2257_v22, %v1509_v8 }
 0x349   :  { %1680 = vst [vmem:[#allocation6 + $0x90] sm:$0xff] %v1656_v39 }
 0x34a   :  { %v2259_v31 = vpop.eup %2258 }
 0x34b   :  { %v2261_v41 = vpop.eup %2260  ;;  %v1659_v43 = vsel %vm2955_vm5, %v2259_v31, %v1524_v20 }
 0x34c   :  { %1683 = vst [vmem:[#allocation6 + $0xa8] sm:$0xff] %v1659_v43  ;;  %v1658_v45 = vsel %vm2955_vm5, %v2261_v41, %v1519_v23 }
 0x34d   :  { %1682 = vst [vmem:[#allocation6 + $0xa0] sm:$0xff] %v1658_v45 }
 0x34f   :  { %v2263_v55 = vpop.eup %2262 }
 0x350   :  { %v2265_v34 = vpop.eup %2264  ;;  %v1661_v48 = vsel %vm2955_vm5, %v2263_v55, %v1534_v36 }
 0x351   :  { %1685 = vst [vmem:[#allocation6 + $0xb8] sm:$0xff] %v1661_v48  ;;  %v1660_v18 = vsel %vm2955_vm5, %v2265_v34, %v1529_v4 }
 0x352   :  { %1684 = vst [vmem:[#allocation6 + $0xb0] sm:$0xff] %v1660_v18 }
 0x353   :  { %2299 = shalt.err (!%p2296_p12)
}
 0x354   :  { %s2300_s17 = scalar_lea.hbm %s3048_s6, 3072 }
 0x355   :  { %p2301_p13 = scmp.ne.s32.totalorder %s3048_s6, %s2300_s17  ;;  %p2304_p0 = scmp.lt.u32.totalorder %s2300_s17, %s3048_s6 }
 0x357   :  { %p2306_p1 = pnand %p2304_p0, %p2301_p13 }
 0x359   :  { %2309 = shalt.err (!%p2306_p1)
}
 0x35a   :  { %1697 = dma.vmem_to_hbm [thread:$0]  %s1692_s13, 3072, %s3048_s6, [#allocation5], %s2315_s7, %s2315_s7, %s2316_s8  }
 0x35b   :  { %2312 = dma.done.wait [#allocation5], 3072  }
 0x35c   :  { %2313 = vsyncadd [#allocation5], 4294964224 }
 0x35d   :  { %1701 = vsyncpa [#allocation4], 1 }
 0x35e   :  { %1702 = vsyncpa [#allocation5], 1 }

</bundles_post_ra>
